<compile_context>
chip_gen: v7x
topology: tpu7x:2x2x1
jax: 0.10.0
libtpu: 0.0.40
codegen_flags: <defaults>
</compile_context>

<pallas_src>
import numpy as np
import jax
import jax.numpy as jnp
from jax import lax
from jax.experimental import pallas as pl
from jax.experimental.pallas import tpu as pltpu


def adaptive_avg_pool1d_matrices(L: int, T: int):
    """Returns (poolT (T, L), p_avg (1, L)).

    poolT[t, l] are the PyTorch AdaptiveAvgPool1d(T) weights (row t averages
    feats[..., start_t:end_t]); p_avg = poolT.mean(axis=0) so that
    p_avg @ feats^T == token_emb.mean(over tokens)."""
    P = np.zeros((T, L), dtype=np.float32)
    for t in range(T):
        start = (t * L) // T
        end = -((-(t + 1) * L) // T)  # ceil((t+1)*L / T)
        P[t, start:end] = 1.0 / float(end - start)
    p_avg = P.mean(axis=0, keepdims=True)  # (1, L)
    return jnp.asarray(P), jnp.asarray(p_avg)


def _ked_wrapper_kernel(feats_ref, poolT_ref, pavg_ref, wT_ref, bias_ref,
                        global_ref, token_ref):
    poolT = poolT_ref[...]                     # (T, L), lane-dense
    pavg = pavg_ref[...]                       # (1, L)
    bt = feats_ref.shape[0]                    # static per-step batch tile

    g_rows = []
    for i in range(bt):                        # small static trip count -> unrolled
        f = feats_ref[i]                       # (C, L)
        # AdaptiveAvgPool1d + transpose fused: (T, L) x (C, L)^T -> (T, C).
        # Lane-dense MXU output; stores straight into token_ref.
        tok_t = lax.dot_general(poolT, f, (((1,), (1,)), ((), ())),
                                preferred_element_type=jnp.float32)  # (T, C)
        token_ref[i] = tok_t.astype(token_ref.dtype)
        # token-mean folded into the matmul path: (1, L) x (C, L)^T -> (1, C).
        g_rows.append(lax.dot_general(pavg, f, (((1,), (1,)), ((), ())),
                                      preferred_element_type=jnp.float32))

    g = jnp.concatenate(g_rows, axis=0) if bt > 1 else g_rows[0]     # (Bt, C)
    # Projection: x @ W^T + bias, one batched MXU call per grid step.
    ge = jnp.dot(g, wT_ref[...],
                 preferred_element_type=jnp.float32) + bias_ref[...]  # (Bt, G)
    global_ref[...] = ge[:, None, :].astype(global_ref.dtype)         # (Bt, 1, G)


def ked_encoder_wrapper(feats, poolT, p_avg, proj_w, proj_b,
                        *, vmem_budget_bytes=24 << 20):
    """feats: (B, 768, L) f32; poolT: (T, L); p_avg: (1, L);
    proj_w: (G, 768); proj_b: (G,).
    Returns (global_emb (B, G), token_emb (B, T, 768))."""
    B, C, L = feats.shape
    T = poolT.shape[0]
    G = proj_w.shape[0]

    wT = proj_w.T                    # (C, G)
    bias2d = proj_b.reshape(1, G)    # (1, G)

    itemsize = jnp.dtype(feats.dtype).itemsize
    # Double-buffered feats-in + token-out bytes per batch element.
    per_b_bytes = 2 * (C * L + T * C) * itemsize
    bt = int(max(1, min(B, vmem_budget_bytes // max(per_b_bytes, 1))))
    while B % bt:                    # keep the grid exact (bt divides B)
        bt -= 1

    # Explicit scoped-VMEM limit: blocks (double-buffered) + weights + slack,
    # kept well under v7x's 64 MiB physical VMEM.
    vmem_limit = (2 * bt * (C * L + T * C + G) * 4
                  + 2 * (T * L + L + C * G + G) * 4
                  + (8 << 20))
    vmem_limit = int(min(max(vmem_limit, 16 << 20), 48 << 20))

    grid_spec = pltpu.PrefetchScalarGridSpec(
        num_scalar_prefetch=0,
        grid=(B // bt,),
        in_specs=[
            pl.BlockSpec((bt, C, L), lambda b: (b, 0, 0)),   # feats, Bt per step
            pl.BlockSpec((T, L), lambda b: (0, 0)),          # pool^T (lane-dense)
            pl.BlockSpec((1, L), lambda b: (0, 0)),          # p_avg row
            pl.BlockSpec((C, G), lambda b: (0, 0)),          # proj weight^T
            pl.BlockSpec((1, G), lambda b: (0, 0)),          # proj bias
        ],
        out_specs=[
            # Per-step global block (no grid-resident slab -> "parallel" is safe).
            pl.BlockSpec((bt, 1, G), lambda b: (b, 0, 0)),
            # Per-step token block, already in (T, C) orientation.
            pl.BlockSpec((bt, T, C), lambda b: (b, 0, 0)),
        ],
    )

    global_emb3, token_emb = pl.pallas_call(
        _ked_wrapper_kernel,
        out_shape=(
            jax.ShapeDtypeStruct((B, 1, G), jnp.float32),
            jax.ShapeDtypeStruct((B, T, C), jnp.float32),
        ),
        grid_spec=grid_spec,
        compiler_params=pltpu.CompilerParams(
            dimension_semantics=("parallel",),
            vmem_limit_bytes=vmem_limit,
        ),
    )(feats, poolT, p_avg, wT, bias2d)

    return global_emb3.reshape(B, G), token_emb


def _reference(feats, poolT, proj_w, proj_b):
    token_emb = jnp.einsum("bcl,tl->btc", feats, poolT)       # (B, T, C)
    global_emb = token_emb.mean(axis=1) @ proj_w.T + proj_b   # (B, G)
    return global_emb, token_emb


if __name__ == "__main__":
    # Small shapes consistent with the module:
    #   C = 768 is fixed by Linear(768, global_dim); small L / token_num / G.
    B, C, L = 2, 768, 64
    token_num = 8            # constructor arg token_num (small)
    global_dim = 128         # constructor arg global_dim (small)

    key = jax.random.PRNGKey(0)
    k_x, k_w, k_b = jax.random.split(key, 3)

    # `x` here plays the role of feats = ked_encoder(x)  (identity stand-in).
    x = jax.random.normal(k_x, (B, C, L), dtype=jnp.float32)

    # Deterministic proj parameters (nn.Linear(768, global_dim) shapes).
    proj_w = 0.02 * jax.random.normal(k_w, (global_dim, C), dtype=jnp.float32)
    proj_b = 0.01 * jax.random.normal(k_b, (global_dim,), dtype=jnp.float32)

    poolT, p_avg = adaptive_avg_pool1d_matrices(L, token_num)   # (T, L), (1, L)

    global_emb, token_emb = ked_encoder_wrapper(x, poolT, p_avg, proj_w, proj_b)
    jax.block_until_ready((global_emb, token_emb))

    g_ref, t_ref = _reference(x, poolT, proj_w, proj_b)
    assert global_emb.shape == (B, global_dim)
    assert token_emb.shape == (B, token_num, C)
    np.testing.assert_allclose(np.asarray(token_emb), np.asarray(t_ref),
                               rtol=1e-5, atol=1e-5)
    np.testing.assert_allclose(np.asarray(global_emb), np.asarray(g_ref),
                               rtol=1e-5, atol=1e-5)

    print("KERNEL_OK")
</pallas_src>

<mosaic_0001>
module attributes {stable_mosaic.version = 11 : i64} {
  func.func @_ked_wrapper_kernel(%arg0: i32, %arg1: memref<2x768x64xf32, #tpu.memory_space<vmem>>, %arg2: memref<8x64xf32, #tpu.memory_space<vmem>>, %arg3: memref<1x64xf32, #tpu.memory_space<vmem>>, %arg4: memref<768x128xf32, #tpu.memory_space<vmem>>, %arg5: memref<1x128xf32, #tpu.memory_space<vmem>>, %arg6: memref<2x1x128xf32, #tpu.memory_space<vmem>>, %arg7: memref<2x8x768xf32, #tpu.memory_space<vmem>>) attributes {dimension_semantics = [#tpu.dimension_semantics<parallel>], iteration_bounds = array<i64: 1>, scalar_prefetch = 0 : i64, scratch_operands = 0 : i64, tpu.core_type = #tpu.core_type<tc>, window_params = [{transform_indices = @transform_0, window_bounds = array<i64: 2, 768, 64>}, {pipeline_mode = #tpu.pipeline_mode<synchronous>, transform_indices = @transform_1, window_bounds = array<i64: 8, 64>}, {pipeline_mode = #tpu.pipeline_mode<synchronous>, transform_indices = @transform_2, window_bounds = array<i64: 1, 64>}, {pipeline_mode = #tpu.pipeline_mode<synchronous>, transform_indices = @transform_3, window_bounds = array<i64: 768, 128>}, {pipeline_mode = #tpu.pipeline_mode<synchronous>, transform_indices = @transform_4, window_bounds = array<i64: 1, 128>}, {transform_indices = @transform_5, window_bounds = array<i64: 2, 1, 128>}, {transform_indices = @transform_6, window_bounds = array<i64: 2, 8, 768>}]} {
    %c0 = arith.constant 0 : index
    %c0_0 = arith.constant 0 : index
    %0 = vector.load %arg2[%c0, %c0_0] : memref<8x64xf32, #tpu.memory_space<vmem>>, vector<8x64xf32>
    %c0_1 = arith.constant 0 : index
    %c0_2 = arith.constant 0 : index
    %1 = vector.load %arg3[%c0_1, %c0_2] : memref<1x64xf32, #tpu.memory_space<vmem>>, vector<1x64xf32>
    %c0_3 = arith.constant 0 : index
    %c0_4 = arith.constant 0 : index
    %c0_5 = arith.constant 0 : index
    %2 = vector.load %arg1[%c0_3, %c0_4, %c0_5] : memref<2x768x64xf32, #tpu.memory_space<vmem>>, vector<1x768x64xf32>
    %3 = vector.shape_cast %2 : vector<1x768x64xf32> to vector<768x64xf32>
    %cst = arith.constant dense<0.000000e+00> : vector<8x768xf32>
    %4 = tpu.matmul %0, %3, %cst {dimension_numbers = #tpu.dot_dimension_numbers<[1], [1], [0], [0], [0, 0, 1, 0], [], []>} : vector<8x64xf32>, vector<768x64xf32>, vector<8x768xf32> -> vector<8x768xf32>
    %c0_6 = arith.constant 0 : index
    %c0_7 = arith.constant 0 : index
    %c0_8 = arith.constant 0 : index
    %5 = vector.load %arg7[%c0_6, %c0_7, %c0_8] : memref<2x8x768xf32, #tpu.memory_space<vmem>>, vector<1x8x768xf32>
    %6 = vector.shape_cast %5 : vector<1x8x768xf32> to vector<8x768xf32>
    %7 = vector.shape_cast %4 : vector<8x768xf32> to vector<1x8x768xf32>
    tpu.vector_store %arg7[%c0_6, %c0_7, %c0_8], %7 {strides = array<i32>} : memref<2x8x768xf32, #tpu.memory_space<vmem>>, vector<1x8x768xf32>,
    %cst_9 = arith.constant dense<0.000000e+00> : vector<1x768xf32>
    %8 = tpu.matmul %1, %3, %cst_9 {dimension_numbers = #tpu.dot_dimension_numbers<[1], [1], [0], [0], [0, 0, 1, 0], [], []>} : vector<1x64xf32>, vector<768x64xf32>, vector<1x768xf32> -> vector<1x768xf32>
    %c1 = arith.constant 1 : index
    %c0_10 = arith.constant 0 : index
    %c0_11 = arith.constant 0 : index
    %9 = vector.load %arg1[%c1, %c0_10, %c0_11] : memref<2x768x64xf32, #tpu.memory_space<vmem>>, vector<1x768x64xf32>
    %10 = vector.shape_cast %9 : vector<1x768x64xf32> to vector<768x64xf32>
    %cst_12 = arith.constant dense<0.000000e+00> : vector<8x768xf32>
    %11 = tpu.matmul %0, %10, %cst_12 {dimension_numbers = #tpu.dot_dimension_numbers<[1], [1], [0], [0], [0, 0, 1, 0], [], []>} : vector<8x64xf32>, vector<768x64xf32>, vector<8x768xf32> -> vector<8x768xf32>
    %c1_13 = arith.constant 1 : index
    %c0_14 = arith.constant 0 : index
    %c0_15 = arith.constant 0 : index
    %12 = vector.load %arg7[%c1_13, %c0_14, %c0_15] : memref<2x8x768xf32, #tpu.memory_space<vmem>>, vector<1x8x768xf32>
    %13 = vector.shape_cast %12 : vector<1x8x768xf32> to vector<8x768xf32>
    %14 = vector.shape_cast %11 : vector<8x768xf32> to vector<1x8x768xf32>
    tpu.vector_store %arg7[%c1_13, %c0_14, %c0_15], %14 {strides = array<i32>} : memref<2x8x768xf32, #tpu.memory_space<vmem>>, vector<1x8x768xf32>,
    %cst_16 = arith.constant dense<0.000000e+00> : vector<1x768xf32>
    %15 = tpu.matmul %1, %10, %cst_16 {dimension_numbers = #tpu.dot_dimension_numbers<[1], [1], [0], [0], [0, 0, 1, 0], [], []>} : vector<1x64xf32>, vector<768x64xf32>, vector<1x768xf32> -> vector<1x768xf32>
    %16 = tpu.concatenate %8, %15 in 0 : vector<1x768xf32>, vector<1x768xf32> -> vector<2x768xf32>
    %c0_17 = arith.constant 0 : index
    %c0_18 = arith.constant 0 : index
    %17 = vector.load %arg4[%c0_17, %c0_18] : memref<768x128xf32, #tpu.memory_space<vmem>>, vector<768x128xf32>
    %cst_19 = arith.constant dense<0.000000e+00> : vector<2x128xf32>
    %18 = tpu.matmul %16, %17, %cst_19 {dimension_numbers = #tpu.dot_dimension_numbers<[1], [0], [0], [1], [0, 0, 1, 1], [], []>} : vector<2x768xf32>, vector<768x128xf32>, vector<2x128xf32> -> vector<2x128xf32>
    %c0_20 = arith.constant 0 : index
    %c0_21 = arith.constant 0 : index
    %19 = vector.load %arg5[%c0_20, %c0_21] : memref<1x128xf32, #tpu.memory_space<vmem>>, vector<1x128xf32>
    %20 = vector.broadcast %19 : vector<1x128xf32> to vector<2x128xf32>
    %21 = arith.addf %18, %20 : vector<2x128xf32>
    %22 = vector.shape_cast %21 : vector<2x128xf32> to vector<2x1x128xf32>
    %c0_22 = arith.constant 0 : index
    %c0_23 = arith.constant 0 : index
    %c0_24 = arith.constant 0 : index
    %23 = vector.load %arg6[%c0_22, %c0_23, %c0_24] : memref<2x1x128xf32, #tpu.memory_space<vmem>>, vector<2x1x128xf32>
    tpu.vector_store %arg6[%c0_22, %c0_23, %c0_24], %22 {strides = array<i32>} : memref<2x1x128xf32, #tpu.memory_space<vmem>>, vector<2x1x128xf32>,
    return
  }
  func.func @transform_0(%arg0: i32) -> (i32, i32, i32) {
    %c0_i32 = arith.constant 0 : i32
    %c0_i32_0 = arith.constant 0 : i32
    %c0_i32_1 = arith.constant 0 : i32
    return %arg0, %c0_i32, %c0_i32_0 : i32, i32, i32
  }
  func.func @transform_1(%arg0: i32) -> (i32, i32) {
    %c0_i32 = arith.constant 0 : i32
    %c0_i32_0 = arith.constant 0 : i32
    %c0_i32_1 = arith.constant 0 : i32
    return %c0_i32, %c0_i32_0 : i32, i32
  }
  func.func @transform_2(%arg0: i32) -> (i32, i32) {
    %c0_i32 = arith.constant 0 : i32
    %c0_i32_0 = arith.constant 0 : i32
    %c0_i32_1 = arith.constant 0 : i32
    return %c0_i32, %c0_i32_0 : i32, i32
  }
  func.func @transform_3(%arg0: i32) -> (i32, i32) {
    %c0_i32 = arith.constant 0 : i32
    %c0_i32_0 = arith.constant 0 : i32
    %c0_i32_1 = arith.constant 0 : i32
    return %c0_i32, %c0_i32_0 : i32, i32
  }
  func.func @transform_4(%arg0: i32) -> (i32, i32) {
    %c0_i32 = arith.constant 0 : i32
    %c0_i32_0 = arith.constant 0 : i32
    %c0_i32_1 = arith.constant 0 : i32
    return %c0_i32, %c0_i32_0 : i32, i32
  }
  func.func @transform_5(%arg0: i32) -> (i32, i32, i32) {
    %c0_i32 = arith.constant 0 : i32
    %c0_i32_0 = arith.constant 0 : i32
    %c0_i32_1 = arith.constant 0 : i32
    return %arg0, %c0_i32, %c0_i32_0 : i32, i32, i32
  }
  func.func @transform_6(%arg0: i32) -> (i32, i32, i32) {
    %c0_i32 = arith.constant 0 : i32
    %c0_i32_0 = arith.constant 0 : i32
    %c0_i32_1 = arith.constant 0 : i32
    return %arg0, %c0_i32, %c0_i32_0 : i32, i32, i32
  }
}

</mosaic_0001>

<bundles_post_ra>
// kernel: tpu_custom_call.1
= control target key start
LH: loop header
LB: loop body
LE: loop exit
PB: predicated region body
PF: predicated region fallthrough
CT: control target
= control target key end

     0   :  { %12 = vsyncpa [#allocation3], 0  ;;  %vm122_vm0 = vcmask 523264   ;;  %s5524_s0 = inlined_call_operand.vmem [shape: f32[2,768,64], index: 0, kind: input, shape index: {}]   ;;  %s5525_s1 = inlined_call_operand.vmem [shape: f32[8,64], index: 1, kind: input, shape index: {}]   ;;  %s5526_s2 = inlined_call_operand.vmem [shape: f32[1,64], index: 2, kind: input, shape index: {}]   ;;  %s5527_s3 = inlined_call_operand.vmem [shape: f32[768,128], index: 3, kind: input, shape index: {}]   ;;  %s5528_s4 = inlined_call_operand.vmem [shape: f32[1,128], index: 4, kind: input, shape index: {}]   ;;  %s5529_s5 = inlined_call_operand.hbm [shape: f32[2,1,128], index: 5, kind: output, shape index: {0}]   ;;  %s5530_s6 = inlined_call_operand.hbm [shape: f32[2,8,768], index: 6, kind: output, shape index: {1}]  }
   0x1   :  { %v42_v0 = vld [vmem:[%s5524_s0 + $0x80] sm:$0xff]  ;;  %v43_v1 = vld [vmem:[%s5524_s0 + $0x88] sm:$0xff]  ;;  %vm3854_vm1 = vmpackc.low %vm122_vm0, %vm122_vm0 }
   0x2   :  { %v74_v2 = vld [vmem:[%s5524_s0 + $0x180] sm:$0xff]  ;;  %v3850_v3 = vpack.c.bf16 %v43_v1, %v42_v0  ;;  %v75_v5 = vld [vmem:[%s5524_s0 + $0x188] sm:$0xff]  ;;  %v44_v13 = vld [vmem:[%s5524_s0 + $0x90] sm:$0xff] }
   0x3   :  { %v26_v6 = vld [vmem:[%s5524_s0] sm:$0xff]  ;;  %v3864_v7 = vpack.c.bf16 %v75_v5, %v74_v2  ;;  %v27_v8 = vld [vmem:[%s5524_s0 + $0x8] sm:$0xff]  ;;  %v45_v14 = vld [vmem:[%s5524_s0 + $0x98] sm:$0xff] }
   0x4   :  { %v58_v9 = vld [vmem:[%s5524_s0 + $0x100] sm:$0xff]  ;;  %v59_v10 = vld [vmem:[%s5524_s0 + $0x108] sm:$0xff]  ;;  %3074 = vmatprep.subr.msk.bf16.mxu0 %vm3854_vm1, %v3850_v3  ;;  %v3878_v11 = vpack.c.bf16 %v27_v8, %v26_v6  ;;  %v76_v15 = vld [vmem:[%s5524_s0 + $0x190] sm:$0xff]  ;;  %v3894_v16 = vpack.c.bf16 %v45_v14, %v44_v13 }
   0x5   :  { %v3880_v12 = vpack.c.bf16 %v59_v10, %v58_v9  ;;  %3122 = vmatprep.subr.msk.bf16.mxu1 %vm3854_vm1, %v3864_v7  ;;  %v77_v17 = vld [vmem:[%s5524_s0 + $0x198] sm:$0xff]  ;;  %v28_v19 = vld [vmem:[%s5524_s0 + $0x10] sm:$0xff]  ;;  %v46_v23 = vld [vmem:[%s5524_s0 + $0xa0] sm:$0xff] }
   0x6   :  { %3077 = vmatpush3.bf16.xpose.msk.msra.mxu0 %vm3854_vm1, %v3878_v11  ;;  %v3905_v18 = vpack.c.bf16 %v77_v17, %v76_v15  ;;  %v29_v20 = vld [vmem:[%s5524_s0 + $0x18] sm:$0xff]  ;;  %v60_v21 = vld [vmem:[%s5524_s0 + $0x110] sm:$0xff]  ;;  %v47_v24 = vld [vmem:[%s5524_s0 + $0xa8] sm:$0xff] }
   0x7   :  { %3125 = vmatpush3.bf16.xpose.msk.msra.mxu1 %vm3854_vm1, %v3880_v12  ;;  %3080 = vmatprep.subr.msk.bf16.mxu0 %vm3854_vm1, %v3894_v16  ;;  %v61_v22 = vld [vmem:[%s5524_s0 + $0x118] sm:$0xff]  ;;  %v78_v25 = vld [vmem:[%s5524_s0 + $0x1a0] sm:$0xff]  ;;  %v79_v26 = vld [vmem:[%s5524_s0 + $0x1a8] sm:$0xff]  ;;  %v3937_v27 = vpack.c.bf16 %v29_v20, %v28_v19  ;;  %v3941_v29 = vpack.c.bf16 %v47_v24, %v46_v23 }
   0x8   :  { %3128 = vmatprep.subr.msk.bf16.mxu1 %vm3854_vm1, %v3905_v18  ;;  %v3939_v28 = vpack.c.bf16 %v61_v22, %v60_v21  ;;  %v3943_v30 = vpack.c.bf16 %v79_v26, %v78_v25  ;;  %v30_v31 = vld [vmem:[%s5524_s0 + $0x20] sm:$0xff]  ;;  %v31_v32 = vld [vmem:[%s5524_s0 + $0x28] sm:$0xff]  ;;  %v48_v35 = vld [vmem:[%s5524_s0 + $0xb0] sm:$0xff] }
   0x9   :  { %v62_v33 = vld [vmem:[%s5524_s0 + $0x120] sm:$0xff]  ;;  %v63_v34 = vld [vmem:[%s5524_s0 + $0x128] sm:$0xff]  ;;  %v49_v36 = vld [vmem:[%s5524_s0 + $0xb8] sm:$0xff]  ;;  %v3981_v39 = vpack.c.bf16 %v31_v32, %v30_v31 }
   0xa   :  { %v80_v37 = vld [vmem:[%s5524_s0 + $0x1b0] sm:$0xff]  ;;  %v81_v38 = vld [vmem:[%s5524_s0 + $0x1b8] sm:$0xff]  ;;  %v3983_v40 = vpack.c.bf16 %v63_v34, %v62_v33  ;;  %v3985_v41 = vpack.c.bf16 %v49_v36, %v48_v35  ;;  %v4004_v45 = vld [vmem:[%s5525_s1] sm:$0xff] }
   0xb   :  { %v3987_v42 = vpack.c.bf16 %v81_v38, %v80_v37  ;;  %v32_v43 = vld [vmem:[%s5524_s0 + $0x30] sm:$0xff]  ;;  %v33_v44 = vld [vmem:[%s5524_s0 + $0x38] sm:$0xff]  ;;  %v50_v48 = vld [vmem:[%s5524_s0 + $0xc0] sm:$0xff]  ;;  %2591 = vmatprep.mubr.msk.f32.mxu0 %vm122_vm0, %v4004_v45  ;;  %2625 = vmatprep.mubr.msk.f32.mxu1 %vm122_vm0, %v4004_v45 }
   0xc   :  { %v64_v46 = vld [vmem:[%s5524_s0 + $0x130] sm:$0xff]  ;;  %v65_v47 = vld [vmem:[%s5524_s0 + $0x138] sm:$0xff]  ;;  %v51_v49 = vld [vmem:[%s5524_s0 + $0xc8] sm:$0xff]  ;;  %v4034_v52 = vpack.c.bf16 %v33_v44, %v32_v43 }
   0xd   :  { %v82_v50 = vld [vmem:[%s5524_s0 + $0x1c0] sm:$0xff]  ;;  %v83_v51 = vld [vmem:[%s5524_s0 + $0x1c8] sm:$0xff]  ;;  %v4036_v53 = vpack.c.bf16 %v65_v47, %v64_v46  ;;  %v4038_v54 = vpack.c.bf16 %v51_v49, %v50_v48  ;;  %v52_v60 = vld [vmem:[%s5524_s0 + $0xd0] sm:$0xff] }
   0xe   :  { %3083 = vmatpush3.bf16.xpose.msk.msra.mxu0 %vm3854_vm1, %v3937_v27  ;;  %v4040_v55 = vpack.c.bf16 %v83_v51, %v82_v50  ;;  %v34_v56 = vld [vmem:[%s5524_s0 + $0x40] sm:$0xff]  ;;  %v35_v57 = vld [vmem:[%s5524_s0 + $0x48] sm:$0xff]  ;;  %v53_v61 = vld [vmem:[%s5524_s0 + $0xd8] sm:$0xff] }
   0xf   :  { %3131 = vmatpush3.bf16.xpose.msk.msra.mxu1 %vm3854_vm1, %v3939_v28  ;;  %3086 = vmatprep.subr.msk.bf16.mxu0 %vm3854_vm1, %v3941_v29  ;;  %v66_v58 = vld [vmem:[%s5524_s0 + $0x140] sm:$0xff]  ;;  %v67_v59 = vld [vmem:[%s5524_s0 + $0x148] sm:$0xff]  ;;  %v84_v62 = vld [vmem:[%s5524_s0 + $0x1d0] sm:$0xff]  ;;  %v4078_v0 = vpack.c.bf16 %v35_v57, %v34_v56 }
  0x10   :  { %3134 = vmatprep.subr.msk.bf16.mxu1 %vm3854_vm1, %v3943_v30  ;;  %v85_v63 = vld [vmem:[%s5524_s0 + $0x1d8] sm:$0xff]  ;;  %v4080_v1 = vpack.c.bf16 %v67_v59, %v66_v58 }
  0x16   :  { %3089 = vmatpush3.bf16.xpose.msk.msra.mxu0 %vm3854_vm1, %v3981_v39 }
  0x17   :  { %3137 = vmatpush3.bf16.xpose.msk.msra.mxu1 %vm3854_vm1, %v3983_v40  ;;  %3092 = vmatprep.subr.msk.bf16.mxu0 %vm3854_vm1, %v3985_v41 }
  0x18   :  { %3140 = vmatprep.subr.msk.bf16.mxu1 %vm3854_vm1, %v3987_v42 }
  0x1e   :  { %3095 = vmatpush3.bf16.xpose.msk.msra.mxu0 %vm3854_vm1, %v4034_v52 }
  0x1f   :  { %3143 = vmatpush3.bf16.xpose.msk.msra.mxu1 %vm3854_vm1, %v4036_v53  ;;  %3098 = vmatprep.subr.msk.bf16.mxu0 %vm3854_vm1, %v4038_v54 }
  0x20   :  { %3146 = vmatprep.subr.msk.bf16.mxu1 %vm3854_vm1, %v4040_v55 }
  0x21   :  { %13 = vsyncpa [#allocation5], 0  ;;  %v4082_v2 = vpack.c.bf16 %v53_v61, %v52_v60  ;;  %v4084_v5 = vpack.c.bf16 %v85_v63, %v84_v62  ;;  %v36_v6 = vld [vmem:[%s5524_s0 + $0x50] sm:$0xff]  ;;  %v37_v8 = vld [vmem:[%s5524_s0 + $0x58] sm:$0xff]  ;;  %vm1685_vm2 = vcmask 1040384  }
  0x22   :  { %v68_v9 = vld [vmem:[%s5524_s0 + $0x150] sm:$0xff]  ;;  %v69_v10 = vld [vmem:[%s5524_s0 + $0x158] sm:$0xff]  ;;  %v54_v13 = vld [vmem:[%s5524_s0 + $0xe0] sm:$0xff]  ;;  %v4122_v19 = vpack.c.bf16 %v37_v8, %v36_v6 }
  0x23   :  { %v55_v14 = vld [vmem:[%s5524_s0 + $0xe8] sm:$0xff]  ;;  %v86_v15 = vld [vmem:[%s5524_s0 + $0x1e0] sm:$0xff]  ;;  %v4124_v20 = vpack.c.bf16 %v69_v10, %v68_v9  ;;  %v56_v31 = vld [vmem:[%s5524_s0 + $0xf0] sm:$0xff] }
  0x24   :  { %v87_v17 = vld [vmem:[%s5524_s0 + $0x1e8] sm:$0xff]  ;;  %v4126_v21 = vpack.c.bf16 %v55_v14, %v54_v13  ;;  %v38_v23 = vld [vmem:[%s5524_s0 + $0x60] sm:$0xff]  ;;  %v57_v32 = vld [vmem:[%s5524_s0 + $0xf8] sm:$0xff] }
  0x25   :  { %v4128_v22 = vpack.c.bf16 %v87_v17, %v86_v15  ;;  %v39_v24 = vld [vmem:[%s5524_s0 + $0x68] sm:$0xff]  ;;  %v70_v25 = vld [vmem:[%s5524_s0 + $0x160] sm:$0xff]  ;;  %v88_v33 = vld [vmem:[%s5524_s0 + $0x1f0] sm:$0xff]  ;;  %v4170_v37 = vpack.c.bf16 %v57_v32, %v56_v31 }
  0x26   :  { %3101 = vmatpush3.bf16.xpose.msk.msra.mxu0 %vm3854_vm1, %v4078_v0  ;;  %v71_v26 = vld [vmem:[%s5524_s0 + $0x168] sm:$0xff]  ;;  %v89_v34 = vld [vmem:[%s5524_s0 + $0x1f8] sm:$0xff]  ;;  %v4166_v35 = vpack.c.bf16 %v39_v24, %v38_v23  ;;  %v40_v43 = vld [vmem:[%s5524_s0 + $0x70] sm:$0xff] }
  0x27   :  { %3149 = vmatpush3.bf16.xpose.msk.msra.mxu1 %vm3854_vm1, %v4080_v1  ;;  %3104 = vmatprep.subr.msk.bf16.mxu0 %vm3854_vm1, %v4082_v2  ;;  %v4168_v36 = vpack.c.bf16 %v71_v26, %v70_v25  ;;  %v4172_v38 = vpack.c.bf16 %v89_v34, %v88_v33  ;;  %v41_v44 = vld [vmem:[%s5524_s0 + $0x78] sm:$0xff]  ;;  %v72_v46 = vld [vmem:[%s5524_s0 + $0x170] sm:$0xff]  ;;  %v106_v48 = vld [vmem:[%s5524_s0 + $0x280] sm:$0xff] }
  0x28   :  { %3152 = vmatprep.subr.msk.bf16.mxu1 %vm3854_vm1, %v4084_v5  ;;  %v73_v47 = vld [vmem:[%s5524_s0 + $0x178] sm:$0xff]  ;;  %v107_v49 = vld [vmem:[%s5524_s0 + $0x288] sm:$0xff]  ;;  %v4204_v50 = vpack.c.bf16 %v41_v44, %v40_v43  ;;  %v90_v57 = vld [vmem:[%s5524_s0 + $0x200] sm:$0xff] }
  0x29   :  { %v4206_v51 = vpack.c.bf16 %v73_v47, %v72_v46  ;;  %v4208_v56 = vpack.c.bf16 %v107_v49, %v106_v48  ;;  %v91_v58 = vld [vmem:[%s5524_s0 + $0x208] sm:$0xff]  ;;  %v108_v59 = vld [vmem:[%s5524_s0 + $0x290] sm:$0xff]  ;;  %v109_v60 = vld [vmem:[%s5524_s0 + $0x298] sm:$0xff] }
  0x2a   :  { %v4234_v61 = vpack.c.bf16 %v91_v58, %v90_v57  ;;  %v4236_v62 = vpack.c.bf16 %v109_v60, %v108_v59  ;;  %v92_v63 = vld [vmem:[%s5524_s0 + $0x210] sm:$0xff]  ;;  %v93_v6 = vld [vmem:[%s5524_s0 + $0x218] sm:$0xff]  ;;  %v111_v8 = vld [vmem:[%s5524_s0 + $0x2a8] sm:$0xff] }
  0x2b   :  { %v94_v10 = vld [vmem:[%s5524_s0 + $0x220] sm:$0xff]  ;;  %v95_v13 = vld [vmem:[%s5524_s0 + $0x228] sm:$0xff]  ;;  %v113_v14 = vld [vmem:[%s5524_s0 + $0x2b8] sm:$0xff] }
  0x2c   :  { %v4303_v15 = vpack.c.bf16 %v95_v13, %v94_v10  ;;  %v97_v23 = vld [vmem:[%s5524_s0 + $0x238] sm:$0xff]  ;;  %v115_v24 = vld [vmem:[%s5524_s0 + $0x2c8] sm:$0xff]  ;;  %v116_v32 = vld [vmem:[%s5524_s0 + $0x2d0] sm:$0xff] }
  0x2d   :  { %v99_v31 = vld [vmem:[%s5524_s0 + $0x248] sm:$0xff]  ;;  %v101_v43 = vld [vmem:[%s5524_s0 + $0x258] sm:$0xff]  ;;  %v118_v44 = vld [vmem:[%s5524_s0 + $0x2e0] sm:$0xff] }
  0x2e   :  { %3107 = vmatpush3.bf16.xpose.msk.msra.mxu0 %vm3854_vm1, %v4122_v19  ;;  %v103_v48 = vld [vmem:[%s5524_s0 + $0x268] sm:$0xff]  ;;  %v120_v49 = vld [vmem:[%s5524_s0 + $0x2f0] sm:$0xff]  ;;  %v105_v59 = vld [vmem:[%s5524_s0 + $0x278] sm:$0xff] }
  0x2f   :  { %3155 = vmatpush3.bf16.xpose.msk.msra.mxu1 %vm3854_vm1, %v4124_v20  ;;  %3110 = vmatprep.subr.msk.bf16.mxu0 %vm3854_vm1, %v4126_v21 }
  0x30   :  { %3158 = vmatprep.subr.msk.bf16.mxu1 %vm3854_vm1, %v4128_v22 }
  0x36   :  { %3113 = vmatpush3.bf16.xpose.msk.msra.mxu0 %vm3854_vm1, %v4166_v35 }
  0x37   :  { %3161 = vmatpush3.bf16.xpose.msk.msra.mxu1 %vm3854_vm1, %v4168_v36  ;;  %3116 = vmatprep.subr.msk.bf16.mxu0 %vm3854_vm1, %v4170_v37 }
  0x38   :  { %3164 = vmatprep.subr.msk.bf16.mxu1 %vm3854_vm1, %v4172_v38 }
  0x3e   :  { %3119 = vmatpush3.bf16.xpose.msk.msra.mxu0 %vm3854_vm1, %v4204_v50 }
  0x3f   :  { %3167 = vmatpush3.bf16.xpose.msk.msra.mxu1 %vm3854_vm1, %v4206_v51  ;;  %3170 = vmatprep.subr.msk.bf16.mxu0 %vm3854_vm1, %v4208_v56 }
  0x40   :  { %3218 = vmatprep.subr.msk.bf16.mxu1 %vm3854_vm1, %v3850_v3  ;;  %v4245_v3 = vld [vmem:[%s5526_s2] sm:$0x1] }
  0x45   :  { %2592 = vmatmul.mubr.msk.f32.vlgmr.msra.gmra.mrb[0].mxu0 %vm122_vm0, %v4004_v45 }
  0x46   :  { %2626 = vmatmul.mubr.msk.f32.vlgmr.msra.gmra.mrb[0].mxu1 %vm122_vm0, %v4004_v45  ;;  %3173 = vmatpush3.bf16.xpose.msk.msra.mxu0 %vm3854_vm1, %v4234_v61 }
  0x47   :  { %3221 = vmatpush3.bf16.xpose.msk.msra.mxu1 %vm3854_vm1, %v3878_v11  ;;  %3176 = vmatprep.subr.msk.bf16.mxu0 %vm3854_vm1, %v4236_v62  ;;  %v110_v11 = vld [vmem:[%s5524_s0 + $0x2a0] sm:$0xff] }
  0x48   :  { %3224 = vmatprep.subr.msk.bf16.mxu1 %vm3854_vm1, %v3894_v16  ;;  %2659 = vmatprep.mubr.msk.f32.mxu0 %vm122_vm0, %v4004_v45  ;;  %v4275_v16 = vpack.c.bf16 %v93_v6, %v92_v63  ;;  %v4277_v9 = vpack.c.bf16 %v111_v8, %v110_v11  ;;  %v2282_v63 = vld [vmem:[%s5524_s0 + $0x3a0] sm:$0xff]  ;;  %v2283_v6 = vld [vmem:[%s5524_s0 + $0x3a8] sm:$0xff] }
  0x49   :  { %2693 = vmatprep.mubr.msk.f32.mxu1 %vm122_vm0, %v4245_v3  ;;  %v2314_v11 = vld [vmem:[%s5524_s0 + $0x4a0] sm:$0xff]  ;;  %v2315_v8 = vld [vmem:[%s5524_s0 + $0x4a8] sm:$0xff]  ;;  %v4615_v10 = vpack.c.bf16 %v2283_v6, %v2282_v63 }
  0x4a   :  { %v4617_v13 = vpack.c.bf16 %v2315_v8, %v2314_v11  ;;  %v2274_v6 = vld [vmem:[%s5524_s0 + $0x360] sm:$0xff]  ;;  %v2275_v11 = vld [vmem:[%s5524_s0 + $0x368] sm:$0xff] }
  0x4b   :  { %v2306_v8 = vld [vmem:[%s5524_s0 + $0x460] sm:$0xff] }
  0x4e   :  { %3179 = vmatpush3.bf16.xpose.msk.msra.mxu0 %vm3854_vm1, %v4275_v16 }
  0x4f   :  { %3227 = vmatpush3.bf16.xpose.msk.msra.mxu1 %vm3854_vm1, %v3937_v27  ;;  %3182 = vmatprep.subr.msk.bf16.mxu0 %vm3854_vm1, %v4277_v9  ;;  %v112_v27 = vld [vmem:[%s5524_s0 + $0x2b0] sm:$0xff] }
  0x50   :  { %3230 = vmatprep.subr.msk.bf16.mxu1 %vm3854_vm1, %v3941_v29  ;;  %v4305_v17 = vpack.c.bf16 %v113_v14, %v112_v27  ;;  %v96_v29 = vld [vmem:[%s5524_s0 + $0x230] sm:$0xff]  ;;  %v2266_v27 = vld [vmem:[%s5524_s0 + $0x320] sm:$0xff]  ;;  %v2267_v14 = vld [vmem:[%s5524_s0 + $0x328] sm:$0xff] }
  0x51   :  { %v3189_v25 = vpack.c.bf16 %v97_v23, %v96_v29  ;;  %v2284_v29 = vld [vmem:[%s5524_s0 + $0x3b0] sm:$0xff]  ;;  %v2285_v23 = vld [vmem:[%s5524_s0 + $0x3b8] sm:$0xff] }
  0x56   :  { %3185 = vmatpush3.bf16.xpose.msk.msra.mxu0 %vm3854_vm1, %v4303_v15 }
  0x57   :  { %3233 = vmatpush3.bf16.xpose.msk.msra.mxu1 %vm3854_vm1, %v3981_v39  ;;  %3188 = vmatprep.subr.msk.bf16.mxu0 %vm3854_vm1, %v4305_v17  ;;  %v114_v39 = vld [vmem:[%s5524_s0 + $0x2c0] sm:$0xff] }
  0x58   :  { %3236 = vmatprep.subr.msk.bf16.mxu1 %vm3854_vm1, %v3985_v41  ;;  %v3192_v26 = vpack.c.bf16 %v115_v24, %v114_v39  ;;  %v98_v41 = vld [vmem:[%s5524_s0 + $0x240] sm:$0xff]  ;;  %v2316_v39 = vld [vmem:[%s5524_s0 + $0x4b0] sm:$0xff]  ;;  %v2317_v24 = vld [vmem:[%s5524_s0 + $0x4b8] sm:$0xff] }
  0x59   :  { %v3195_v33 = vpack.c.bf16 %v99_v31, %v98_v41  ;;  %v4659_v41 = vpack.c.bf16 %v2285_v23, %v2284_v29  ;;  %v4661_v31 = vpack.c.bf16 %v2317_v24, %v2316_v39  ;;  %v2325_v29 = vld [vmem:[%s5524_s0 + $0x4f8] sm:$0xff]  ;;  %v4831_v23 = vpack.c.bf16 %v2275_v11, %v2274_v6 }
  0x5a   :  { %v2333_v6 = vld [vmem:[%s5524_s0 + $0x538] sm:$0xff] }
  0x5e   :  { %3191 = vmatpush3.bf16.xpose.msk.msra.mxu0 %vm3854_vm1, %v3189_v25 }
  0x5f   :  { %3239 = vmatpush3.bf16.xpose.msk.msra.mxu1 %vm3854_vm1, %v4034_v52  ;;  %3194 = vmatprep.subr.msk.bf16.mxu0 %vm3854_vm1, %v3192_v26  ;;  %v117_v52 = vld [vmem:[%s5524_s0 + $0x2d8] sm:$0xff] }
  0x60   :  { %3242 = vmatprep.subr.msk.bf16.mxu1 %vm3854_vm1, %v4038_v54  ;;  %v3198_v34 = vpack.c.bf16 %v117_v52, %v116_v32  ;;  %v100_v54 = vld [vmem:[%s5524_s0 + $0x250] sm:$0xff]  ;;  %v2269_v52 = vld [vmem:[%s5524_s0 + $0x338] sm:$0xff] }
  0x61   :  { %v3201_v46 = vpack.c.bf16 %v101_v43, %v100_v54  ;;  %v2268_v32 = vld [vmem:[%s5524_s0 + $0x330] sm:$0xff]  ;;  %v2286_v54 = vld [vmem:[%s5524_s0 + $0x3c0] sm:$0xff]  ;;  %v2287_v43 = vld [vmem:[%s5524_s0 + $0x3c8] sm:$0xff] }
  0x66   :  { %3197 = vmatpush3.bf16.xpose.msk.msra.mxu0 %vm3854_vm1, %v3195_v33 }
  0x67   :  { %3245 = vmatpush3.bf16.xpose.msk.msra.mxu1 %vm3854_vm1, %v4078_v0  ;;  %3200 = vmatprep.subr.msk.bf16.mxu0 %vm3854_vm1, %v3198_v34  ;;  %v119_v0 = vld [vmem:[%s5524_s0 + $0x2e8] sm:$0xff] }
  0x68   :  { %3248 = vmatprep.subr.msk.bf16.mxu1 %vm3854_vm1, %v4082_v2  ;;  %v3204_v47 = vpack.c.bf16 %v119_v0, %v118_v44  ;;  %v102_v2 = vld [vmem:[%s5524_s0 + $0x260] sm:$0xff]  ;;  %v2319_v0 = vld [vmem:[%s5524_s0 + $0x4c8] sm:$0xff] }
  0x69   :  { %v3207_v57 = vpack.c.bf16 %v103_v48, %v102_v2  ;;  %v2318_v44 = vld [vmem:[%s5524_s0 + $0x4c0] sm:$0xff]  ;;  %v4703_v2 = vpack.c.bf16 %v2287_v43, %v2286_v54  ;;  %v2309_v54 = vld [vmem:[%s5524_s0 + $0x478] sm:$0xff] }
  0x6a   :  { %v4705_v48 = vpack.c.bf16 %v2319_v0, %v2318_v44  ;;  %v2342_v43 = vld [vmem:[%s5524_s0 + $0x580] sm:$0xff]  ;;  %v2343_v44 = vld [vmem:[%s5524_s0 + $0x588] sm:$0xff] }
  0x6e   :  { %3203 = vmatpush3.bf16.xpose.msk.msra.mxu0 %vm3854_vm1, %v3201_v46 }
  0x6f   :  { %3251 = vmatpush3.bf16.xpose.msk.msra.mxu1 %vm3854_vm1, %v4122_v19  ;;  %3206 = vmatprep.subr.msk.bf16.mxu0 %vm3854_vm1, %v3204_v47  ;;  %v121_v19 = vld [vmem:[%s5524_s0 + $0x2f8] sm:$0xff] }
  0x70   :  { %3254 = vmatprep.subr.msk.bf16.mxu1 %vm3854_vm1, %v4126_v21  ;;  %v3210_v58 = vpack.c.bf16 %v121_v19, %v120_v49  ;;  %v104_v21 = vld [vmem:[%s5524_s0 + $0x270] sm:$0xff]  ;;  %v2270_v49 = vld [vmem:[%s5524_s0 + $0x340] sm:$0xff]  ;;  %v2271_v19 = vld [vmem:[%s5524_s0 + $0x348] sm:$0xff] }
  0x71   :  { %v3213_v60 = vpack.c.bf16 %v105_v59, %v104_v21  ;;  %v2288_v21 = vld [vmem:[%s5524_s0 + $0x3d0] sm:$0xff]  ;;  %v2289_v59 = vld [vmem:[%s5524_s0 + $0x3d8] sm:$0xff] }
  0x76   :  { %3209 = vmatpush3.bf16.xpose.msk.msra.mxu0 %vm3854_vm1, %v3207_v57 }
  0x77   :  { %3257 = vmatpush3.bf16.xpose.msk.msra.mxu1 %vm3854_vm1, %v4166_v35  ;;  %3212 = vmatprep.subr.msk.bf16.mxu0 %vm3854_vm1, %v3210_v58  ;;  %v2313_v35 = vld [vmem:[%s5524_s0 + $0x498] sm:$0xff] }
  0x78   :  { %3260 = vmatprep.subr.msk.bf16.mxu1 %vm3854_vm1, %v4170_v37 }
  0x7e   :  { %3215 = vmatpush3.bf16.xpose.msk.msra.mxu0 %vm3854_vm1, %v3213_v60 }
  0x7f   :  { %3263 = vmatpush3.bf16.xpose.msk.msra.mxu1 %vm3854_vm1, %v4204_v50  ;;  %3266 = vmatprep.subr.msk.bf16.mxu0 %vm3854_vm1, %v3864_v7  ;;  %v2278_v7 = vld [vmem:[%s5524_s0 + $0x380] sm:$0xff] }
  0x80   :  { %3314 = vmatprep.subr.msk.bf16.mxu1 %vm3854_vm1, %v4208_v56  ;;  %v2265_v56 = vld [vmem:[%s5524_s0 + $0x318] sm:$0xff] }
  0x85   :  { %2660 = vmatmul.mubr.msk.f32.vlgmr.msra.gmra.mrb[2].mxu0 %vm122_vm0, %v4004_v45 }
  0x86   :  { %2694 = vmatmul.mubr.msk.f32.vlgmr.msra.gmra.mrb[2].mxu1 %vm122_vm0, %v4245_v3  ;;  %3269 = vmatpush3.bf16.xpose.msk.msra.mxu0 %vm3854_vm1, %v3880_v12  ;;  %v2279_v12 = vld [vmem:[%s5524_s0 + $0x388] sm:$0xff] }
  0x87   :  { %3317 = vmatpush3.bf16.xpose.msk.msra.mxu1 %vm3854_vm1, %v4234_v61  ;;  %3272 = vmatprep.subr.msk.bf16.mxu0 %vm3854_vm1, %v3905_v18  ;;  %v2310_v18 = vld [vmem:[%s5524_s0 + $0x480] sm:$0xff]  ;;  %v2296_v61 = vld [vmem:[%s5524_s0 + $0x410] sm:$0xff] }
  0x88   :  { %3320 = vmatprep.subr.msk.bf16.mxu1 %vm3854_vm1, %v4236_v62  ;;  %2727 = vmatprep.mubr.msk.f32.mxu0 %vm122_vm0, %v4245_v3  ;;  %v2297_v62 = vld [vmem:[%s5524_s0 + $0x418] sm:$0xff] }
  0x89   :  { %2761 = vmatprep.mubr.msk.f32.mxu1 %vm122_vm0, %v4245_v3 }
  0x8e   :  { %3275 = vmatpush3.bf16.xpose.msk.msra.mxu0 %vm3854_vm1, %v3939_v28  ;;  %v2311_v28 = vld [vmem:[%s5524_s0 + $0x488] sm:$0xff] }
  0x8f   :  { %3323 = vmatpush3.bf16.xpose.msk.msra.mxu1 %vm3854_vm1, %v4275_v16  ;;  %3278 = vmatprep.subr.msk.bf16.mxu0 %vm3854_vm1, %v3943_v30  ;;  %v4520_v30 = vpack.c.bf16 %v2279_v12, %v2278_v7  ;;  %v2321_v7 = vld [vmem:[%s5524_s0 + $0x4d8] sm:$0xff]  ;;  %v4743_v12 = vpack.c.bf16 %v2271_v19, %v2270_v49  ;;  %v4873_v19 = vpack.c.bf16 %v2343_v44, %v2342_v43  ;;  %v2354_v44 = vld [vmem:[%s5524_s0 + $0x5e0] sm:$0xff] }
  0x90   :  { %3326 = vmatprep.subr.msk.bf16.mxu1 %vm3854_vm1, %v4277_v9  ;;  %v4613_v9 = vpack.c.bf16 %v2297_v62, %v2296_v61  ;;  %v2337_v43 = vld [vmem:[%s5524_s0 + $0x558] sm:$0xff] }
  0x96   :  { %3281 = vmatpush3.bf16.xpose.msk.msra.mxu0 %vm3854_vm1, %v3983_v40  ;;  %v4522_v40 = vpack.c.bf16 %v2311_v28, %v2310_v18  ;;  %v4747_v28 = vpack.c.bf16 %v2289_v59, %v2288_v21  ;;  %v2344_v21 = vld [vmem:[%s5524_s0 + $0x590] sm:$0xff]  ;;  %v2345_v59 = vld [vmem:[%s5524_s0 + $0x598] sm:$0xff] }
  0x97   :  { %3329 = vmatpush3.bf16.xpose.msk.msra.mxu1 %vm3854_vm1, %v4303_v15  ;;  %3284 = vmatprep.subr.msk.bf16.mxu0 %vm3854_vm1, %v3987_v42  ;;  %v2262_v42 = vld [vmem:[%s5524_s0 + $0x300] sm:$0xff] }
  0x98   :  { %3332 = vmatprep.subr.msk.bf16.mxu1 %vm3854_vm1, %v4305_v17  ;;  %v2298_v15 = vld [vmem:[%s5524_s0 + $0x420] sm:$0xff]  ;;  %v2299_v17 = vld [vmem:[%s5524_s0 + $0x428] sm:$0xff] }
  0x9e   :  { %3287 = vmatpush3.bf16.xpose.msk.msra.mxu0 %vm3854_vm1, %v4036_v53  ;;  %v2263_v53 = vld [vmem:[%s5524_s0 + $0x308] sm:$0xff] }
  0x9f   :  { %3335 = vmatpush3.bf16.xpose.msk.msra.mxu1 %vm3854_vm1, %v3189_v25  ;;  %3290 = vmatprep.subr.msk.bf16.mxu0 %vm3854_vm1, %v4040_v55  ;;  %v2294_v55 = vld [vmem:[%s5524_s0 + $0x400] sm:$0xff]  ;;  %v4655_v25 = vpack.c.bf16 %v2267_v14, %v2266_v27  ;;  %v2307_v27 = vld [vmem:[%s5524_s0 + $0x468] sm:$0xff]  ;;  %v2292_v14 = vld [vmem:[%s5524_s0 + $0x3f0] sm:$0xff] }
  0xa0   :  { %3338 = vmatprep.subr.msk.bf16.mxu1 %vm3854_vm1, %v3192_v26  ;;  %v4657_v26 = vpack.c.bf16 %v2299_v17, %v2298_v15  ;;  %v2293_v15 = vld [vmem:[%s5524_s0 + $0x3f8] sm:$0xff]  ;;  %v2324_v17 = vld [vmem:[%s5524_s0 + $0x4f0] sm:$0xff]  ;;  %v4833_v39 = vpack.c.bf16 %v2307_v27, %v2306_v8  ;;  %v2351_v27 = vld [vmem:[%s5524_s0 + $0x5c8] sm:$0xff] }
  0xa1   :  { %v4835_v24 = vpack.c.bf16 %v2293_v15, %v2292_v14 }
  0xa6   :  { %3293 = vmatpush3.bf16.xpose.msk.msra.mxu0 %vm3854_vm1, %v4080_v1  ;;  %v2295_v1 = vld [vmem:[%s5524_s0 + $0x408] sm:$0xff] }
  0xa7   :  { %3341 = vmatpush3.bf16.xpose.msk.msra.mxu1 %vm3854_vm1, %v3195_v33  ;;  %3296 = vmatprep.subr.msk.bf16.mxu0 %vm3854_vm1, %v4084_v5  ;;  %v2280_v5 = vld [vmem:[%s5524_s0 + $0x390] sm:$0xff]  ;;  %v4561_v37 = vpack.c.bf16 %v2295_v1, %v2294_v55  ;;  %v2273_v55 = vld [vmem:[%s5524_s0 + $0x358] sm:$0xff] }
  0xa8   :  { %3344 = vmatprep.subr.msk.bf16.mxu1 %vm3854_vm1, %v3198_v34  ;;  %v2300_v33 = vld [vmem:[%s5524_s0 + $0x430] sm:$0xff]  ;;  %v2301_v34 = vld [vmem:[%s5524_s0 + $0x438] sm:$0xff] }
  0xa9   :  { %v2304_v1 = vld [vmem:[%s5524_s0 + $0x450] sm:$0xff] }
  0xae   :  { %3299 = vmatpush3.bf16.xpose.msk.msra.mxu0 %vm3854_vm1, %v4124_v20  ;;  %v2281_v20 = vld [vmem:[%s5524_s0 + $0x398] sm:$0xff] }
  0xaf   :  { %3347 = vmatpush3.bf16.xpose.msk.msra.mxu1 %vm3854_vm1, %v3201_v46  ;;  %3302 = vmatprep.subr.msk.bf16.mxu0 %vm3854_vm1, %v4128_v22  ;;  %v2312_v22 = vld [vmem:[%s5524_s0 + $0x490] sm:$0xff]  ;;  %v4699_v46 = vpack.c.bf16 %v2269_v52, %v2268_v32  ;;  %v4837_v32 = vpack.c.bf16 %v2325_v29, %v2324_v17  ;;  %v2334_v29 = vld [vmem:[%s5524_s0 + $0x540] sm:$0xff] }
  0xb0   :  { %3350 = vmatprep.subr.msk.bf16.mxu1 %vm3854_vm1, %v3204_v47  ;;  %v4565_v50 = vpack.c.bf16 %v2313_v35, %v2312_v22  ;;  %v4701_v47 = vpack.c.bf16 %v2301_v34, %v2300_v33  ;;  %v2291_v22 = vld [vmem:[%s5524_s0 + $0x3e8] sm:$0xff]  ;;  %v2322_v35 = vld [vmem:[%s5524_s0 + $0x4e0] sm:$0xff]  ;;  %v2276_v52 = vld [vmem:[%s5524_s0 + $0x370] sm:$0xff] }
  0xb1   :  { %v2277_v33 = vld [vmem:[%s5524_s0 + $0x378] sm:$0xff]  ;;  %v2308_v34 = vld [vmem:[%s5524_s0 + $0x470] sm:$0xff] }
  0xb2   :  { %v4869_v0 = vpack.c.bf16 %v2277_v33, %v2276_v52  ;;  %v4871_v49 = vpack.c.bf16 %v2309_v54, %v2308_v34  ;;  %v2335_v52 = vld [vmem:[%s5524_s0 + $0x548] sm:$0xff]  ;;  %v2353_v33 = vld [vmem:[%s5524_s0 + $0x5d8] sm:$0xff] }
  0xb3   :  { %v3483_v34 = vpack.c.bf16 %v2335_v52, %v2334_v29  ;;  %v1704_v29 = vld [vmem:[%s5527_s3 + $0x60] sm:$0xff]  ;;  %v1705_v52 = vld [vmem:[%s5527_s3 + $0x68] sm:$0xff] }
  0xb6   :  { %3305 = vmatpush3.bf16.xpose.msk.msra.mxu0 %vm3854_vm1, %v4168_v36  ;;  %v4559_v36 = vpack.c.bf16 %v2263_v53, %v2262_v42  ;;  %v2272_v53 = vld [vmem:[%s5524_s0 + $0x350] sm:$0xff] }
  0xb7   :  { %3353 = vmatpush3.bf16.xpose.msk.msra.mxu1 %vm3854_vm1, %v3207_v57  ;;  %3308 = vmatprep.subr.msk.bf16.mxu0 %vm3854_vm1, %v4172_v38  ;;  %v4563_v38 = vpack.c.bf16 %v2281_v20, %v2280_v5  ;;  %v2302_v57 = vld [vmem:[%s5524_s0 + $0x440] sm:$0xff]  ;;  %v2305_v5 = vld [vmem:[%s5524_s0 + $0x458] sm:$0xff] }
  0xb8   :  { %3356 = vmatprep.subr.msk.bf16.mxu1 %vm3854_vm1, %v3210_v58  ;;  %v2303_v58 = vld [vmem:[%s5524_s0 + $0x448] sm:$0xff]  ;;  %v2290_v20 = vld [vmem:[%s5524_s0 + $0x3e0] sm:$0xff]  ;;  %v4789_v61 = vpack.c.bf16 %v2305_v5, %v2304_v1 }
  0xb9   :  { %v4745_v18 = vpack.c.bf16 %v2303_v58, %v2302_v57  ;;  %v4791_v62 = vpack.c.bf16 %v2291_v22, %v2290_v20  ;;  %v2326_v57 = vld [vmem:[%s5524_s0 + $0x500] sm:$0xff]  ;;  %v2327_v58 = vld [vmem:[%s5524_s0 + $0x508] sm:$0xff]  ;;  %v2349_v22 = vld [vmem:[%s5524_s0 + $0x5b8] sm:$0xff] }
  0xba   :  { %v2330_v5 = vld [vmem:[%s5524_s0 + $0x520] sm:$0xff]  ;;  %v2331_v20 = vld [vmem:[%s5524_s0 + $0x528] sm:$0xff] }
  0xbe   :  { %3311 = vmatpush3.bf16.xpose.msk.msra.mxu0 %vm3854_vm1, %v4206_v51  ;;  %v2264_v51 = vld [vmem:[%s5524_s0 + $0x310] sm:$0xff] }
  0xbf   :  { %3359 = vmatpush3.bf16.xpose.msk.msra.mxu1 %vm3854_vm1, %v3213_v60  ;;  %3362 = vmatprep.subr.msk.bf16.mxu0 %vm3854_vm1, %v4520_v30  ;;  %v4611_v16 = vpack.c.bf16 %v2265_v56, %v2264_v51  ;;  %v2320_v60 = vld [vmem:[%s5524_s0 + $0x4d0] sm:$0xff]  ;;  %v2323_v51 = vld [vmem:[%s5524_s0 + $0x4e8] sm:$0xff]  ;;  %v4787_v56 = vpack.c.bf16 %v2273_v55, %v2272_v53  ;;  %v2329_v53 = vld [vmem:[%s5524_s0 + $0x518] sm:$0xff] }
  0xc0   :  { %3410 = vmatprep.subr.msk.bf16.mxu1 %vm3854_vm1, %v4522_v40  ;;  %v4749_v42 = vpack.c.bf16 %v2321_v7, %v2320_v60  ;;  %v4793_v63 = vpack.c.bf16 %v2323_v51, %v2322_v35  ;;  %v4899_v60 = vpack.c.bf16 %v2327_v58, %v2326_v57  ;;  %v4901_v7 = vpack.c.bf16 %v2345_v59, %v2344_v21  ;;  %v2347_v55 = vld [vmem:[%s5524_s0 + $0x5a8] sm:$0xff]  ;;  %v2356_v59 = vld [vmem:[%s5524_s0 + $0x5f0] sm:$0xff] }
  0xc1   :  { %v4963_v35 = vpack.c.bf16 %v2331_v20, %v2330_v5  ;;  %v2339_v21 = vld [vmem:[%s5524_s0 + $0x568] sm:$0xff]  ;;  %v1716_v5 = vld [vmem:[%s5527_s3 + $0xc0] sm:$0xff] }
  0xc2   :  { %v1717_v20 = vld [vmem:[%s5527_s3 + $0xc8] sm:$0xff] }
  0xc5   :  { %2728 = vmatmul.mubr.msk.f32.vlgmr.msra.gmra.mrb[4].mxu0 %vm122_vm0, %v4245_v3 }
  0xc6   :  { %2762 = vmatmul.mubr.msk.f32.vlgmr.msra.gmra.mrb[4].mxu1 %vm122_vm0, %v4245_v3  ;;  %3365 = vmatpush3.bf16.xpose.msk.msra.mxu0 %vm3854_vm1, %v4559_v36 }
  0xc7   :  { %3413 = vmatpush3.bf16.xpose.msk.msra.mxu1 %vm3854_vm1, %v4561_v37  ;;  %3368 = vmatprep.subr.msk.bf16.mxu0 %vm3854_vm1, %v4563_v38 }
  0xc8   :  { %3416 = vmatprep.subr.msk.bf16.mxu1 %vm3854_vm1, %v4565_v50  ;;  %2795 = vmatprep.mubr.msk.f32.mxu0 %vm122_vm0, %v4004_v45 }
  0xc9   :  { %2829 = vmatprep.mubr.msk.f32.mxu1 %vm122_vm0, %v4004_v45 }
  0xce   :  { %3371 = vmatpush3.bf16.xpose.msk.msra.mxu0 %vm3854_vm1, %v4611_v16 }
  0xcf   :  { %3419 = vmatpush3.bf16.xpose.msk.msra.mxu1 %vm3854_vm1, %v4613_v9  ;;  %3374 = vmatprep.subr.msk.bf16.mxu0 %vm3854_vm1, %v4615_v10 }
  0xd0   :  { %3422 = vmatprep.subr.msk.bf16.mxu1 %vm3854_vm1, %v4617_v13 }
  0xd6   :  { %3377 = vmatpush3.bf16.xpose.msk.msra.mxu0 %vm3854_vm1, %v4655_v25 }
  0xd7   :  { %3425 = vmatpush3.bf16.xpose.msk.msra.mxu1 %vm3854_vm1, %v4657_v26  ;;  %3380 = vmatprep.subr.msk.bf16.mxu0 %vm3854_vm1, %v4659_v41 }
  0xd8   :  { %3428 = vmatprep.subr.msk.bf16.mxu1 %vm3854_vm1, %v4661_v31 }
  0xde   :  { %3383 = vmatpush3.bf16.xpose.msk.msra.mxu0 %vm3854_vm1, %v4699_v46 }
  0xdf   :  { %3431 = vmatpush3.bf16.xpose.msk.msra.mxu1 %vm3854_vm1, %v4701_v47  ;;  %3386 = vmatprep.subr.msk.bf16.mxu0 %vm3854_vm1, %v4703_v2 }
  0xe0   :  { %3434 = vmatprep.subr.msk.bf16.mxu1 %vm3854_vm1, %v4705_v48 }
  0xe6   :  { %3389 = vmatpush3.bf16.xpose.msk.msra.mxu0 %vm3854_vm1, %v4743_v12 }
  0xe7   :  { %3437 = vmatpush3.bf16.xpose.msk.msra.mxu1 %vm3854_vm1, %v4745_v18  ;;  %3392 = vmatprep.subr.msk.bf16.mxu0 %vm3854_vm1, %v4747_v28 }
  0xe8   :  { %3440 = vmatprep.subr.msk.bf16.mxu1 %vm3854_vm1, %v4749_v42 }
  0xee   :  { %3395 = vmatpush3.bf16.xpose.msk.msra.mxu0 %vm3854_vm1, %v4787_v56 }
  0xef   :  { %3443 = vmatpush3.bf16.xpose.msk.msra.mxu1 %vm3854_vm1, %v4789_v61  ;;  %3398 = vmatprep.subr.msk.bf16.mxu0 %vm3854_vm1, %v4791_v62 }
  0xf0   :  { %3446 = vmatprep.subr.msk.bf16.mxu1 %vm3854_vm1, %v4793_v63 }
  0xf6   :  { %3401 = vmatpush3.bf16.xpose.msk.msra.mxu0 %vm3854_vm1, %v4831_v23 }
  0xf7   :  { %3449 = vmatpush3.bf16.xpose.msk.msra.mxu1 %vm3854_vm1, %v4833_v39  ;;  %3404 = vmatprep.subr.msk.bf16.mxu0 %vm3854_vm1, %v4835_v24 }
  0xf8   :  { %3452 = vmatprep.subr.msk.bf16.mxu1 %vm3854_vm1, %v4837_v32 }
  0xfe   :  { %3407 = vmatpush3.bf16.xpose.msk.msra.mxu0 %vm3854_vm1, %v4869_v0 }
  0xff   :  { %3455 = vmatpush3.bf16.xpose.msk.msra.mxu1 %vm3854_vm1, %v4871_v49  ;;  %3458 = vmatprep.subr.msk.bf16.mxu0 %vm3854_vm1, %v4873_v19 }
 0x100   :  { %3506 = vmatprep.subr.msk.bf16.mxu1 %vm3854_vm1, %v4520_v30  ;;  %v2328_v30 = vld [vmem:[%s5524_s0 + $0x510] sm:$0xff] }
 0x105   :  { %2796 = vmatmul.mubr.msk.f32.vlgmr.msra.gmra.mrb[6].mxu0 %vm122_vm0, %v4004_v45 }
 0x106   :  { %2830 = vmatmul.mubr.msk.f32.vlgmr.msra.gmra.mrb[6].mxu1 %vm122_vm0, %v4004_v45  ;;  %3461 = vmatpush3.bf16.xpose.msk.msra.mxu0 %vm3854_vm1, %v4899_v60 }
 0x107   :  { %3509 = vmatpush3.bf16.xpose.msk.msra.mxu1 %vm3854_vm1, %v4559_v36  ;;  %3464 = vmatprep.subr.msk.bf16.mxu0 %vm3854_vm1, %v4901_v7  ;;  %v2346_v36 = vld [vmem:[%s5524_s0 + $0x5a0] sm:$0xff] }
 0x108   :  { %3512 = vmatprep.subr.msk.bf16.mxu1 %vm3854_vm1, %v4563_v38  ;;  %2863 = vmatprep.mubr.msk.f32.mxu0 %vm122_vm0, %v4004_v45  ;;  %v4935_v38 = vpack.c.bf16 %v2329_v53, %v2328_v30  ;;  %v4937_v1 = vpack.c.bf16 %v2347_v55, %v2346_v36  ;;  %v2341_v36 = vld [vmem:[%s5524_s0 + $0x578] sm:$0xff] }
 0x109   :  { %2897 = vmatprep.mubr.msk.f32.mxu1 %vm122_vm0, %v4245_v3 }
 0x10e   :  { %3467 = vmatpush3.bf16.xpose.msk.msra.mxu0 %vm3854_vm1, %v4935_v38 }
 0x10f   :  { %3515 = vmatpush3.bf16.xpose.msk.msra.mxu1 %vm3854_vm1, %v4611_v16  ;;  %3470 = vmatprep.subr.msk.bf16.mxu0 %vm3854_vm1, %v4937_v1  ;;  %v2348_v16 = vld [vmem:[%s5524_s0 + $0x5b0] sm:$0xff] }
 0x110   :  { %3518 = vmatprep.subr.msk.bf16.mxu1 %vm3854_vm1, %v4615_v10  ;;  %v4965_v51 = vpack.c.bf16 %v2349_v22, %v2348_v16  ;;  %v2332_v10 = vld [vmem:[%s5524_s0 + $0x530] sm:$0xff]  ;;  %v3664_v22 = vpack.c.bf16 %v1717_v20, %v1716_v5  ;;  %v1751_v20 = vld [vmem:[%s5527_s3 + $0x1d8] sm:$0xff] }
 0x111   :  { %v4991_v15 = vpack.c.bf16 %v2333_v6, %v2332_v10  ;;  %v1718_v10 = vld [vmem:[%s5527_s3 + $0xd0] sm:$0xff]  ;;  %v1719_v6 = vld [vmem:[%s5527_s3 + $0xd8] sm:$0xff] }
 0x112   :  { %v1750_v5 = vld [vmem:[%s5527_s3 + $0x1d0] sm:$0xff] }
 0x116   :  { %3473 = vmatpush3.bf16.xpose.msk.msra.mxu0 %vm3854_vm1, %v4963_v35 }
 0x117   :  { %3521 = vmatpush3.bf16.xpose.msk.msra.mxu1 %vm3854_vm1, %v4655_v25  ;;  %3476 = vmatprep.subr.msk.bf16.mxu0 %vm3854_vm1, %v4965_v51  ;;  %v2350_v25 = vld [vmem:[%s5524_s0 + $0x5c0] sm:$0xff] }
 0x118   :  { %3524 = vmatprep.subr.msk.bf16.mxu1 %vm3854_vm1, %v4659_v41  ;;  %v480_v11 = vpop.f32.mrb[0].mxu0  ;;  %v4993_v17 = vpack.c.bf16 %v2351_v27, %v2350_v25  ;;  %v1702_v25 = vld [vmem:[%s5527_s3 + $0x50] sm:$0xff]  ;;  %v1703_v27 = vld [vmem:[%s5527_s3 + $0x58] sm:$0xff] }
 0x119   :  { %v551_v8 = vpop.f32.mrb[0].mxu1  ;;  %627 = vst [vmem:[#allocation4] sm:$0xff] %v480_v11  ;;  %v482_v41 = vpop.f32.mrb[1].mxu0 }
 0x11a   :  { %629 = vst [vmem:[#allocation4 + $0x10] sm:$0xff] %v551_v8  ;;  %v553_v14 = vpop.f32.mrb[1].mxu1  ;;  %628 = vst [vmem:[#allocation4 + $0x8] sm:$0xff] %v482_v41  ;;  %v3668_v8 = vpack.c.bf16 %v1719_v6, %v1718_v10  ;;  %v1720_v41 = vld [vmem:[%s5527_s3 + $0xe0] sm:$0xff]  ;;  %v1753_v6 = vld [vmem:[%s5527_s3 + $0x1e8] sm:$0xff] }
 0x11b   :  { %630 = vst [vmem:[#allocation4 + $0x18] sm:$0xff] %v553_v14  ;;  %v1721_v14 = vld [vmem:[%s5527_s3 + $0xe8] sm:$0xff]  ;;  %v1752_v10 = vld [vmem:[%s5527_s3 + $0x1e0] sm:$0xff] }
 0x11e   :  { %3479 = vmatpush3.bf16.xpose.msk.msra.mxu0 %vm3854_vm1, %v4991_v15 }
 0x11f   :  { %3527 = vmatpush3.bf16.xpose.msk.msra.mxu1 %vm3854_vm1, %v4699_v46  ;;  %3482 = vmatprep.subr.msk.bf16.mxu0 %vm3854_vm1, %v4993_v17  ;;  %v2352_v46 = vld [vmem:[%s5524_s0 + $0x5d0] sm:$0xff] }
 0x120   :  { %3530 = vmatprep.subr.msk.bf16.mxu1 %vm3854_vm1, %v4703_v2  ;;  %v3486_v54 = vpack.c.bf16 %v2353_v33, %v2352_v46  ;;  %v2336_v2 = vld [vmem:[%s5524_s0 + $0x550] sm:$0xff] }
 0x121   :  { %v3489_v57 = vpack.c.bf16 %v2337_v43, %v2336_v2 }
 0x126   :  { %3485 = vmatpush3.bf16.xpose.msk.msra.mxu0 %vm3854_vm1, %v3483_v34 }
 0x127   :  { %3533 = vmatpush3.bf16.xpose.msk.msra.mxu1 %vm3854_vm1, %v4743_v12  ;;  %3488 = vmatprep.subr.msk.bf16.mxu0 %vm3854_vm1, %v3486_v54  ;;  %v2355_v12 = vld [vmem:[%s5524_s0 + $0x5e8] sm:$0xff] }
 0x128   :  { %3536 = vmatprep.subr.msk.bf16.mxu1 %vm3854_vm1, %v4747_v28  ;;  %v3492_v58 = vpack.c.bf16 %v2355_v12, %v2354_v44  ;;  %v2338_v28 = vld [vmem:[%s5524_s0 + $0x560] sm:$0xff]  ;;  %v3674_v44 = vpack.c.bf16 %v1705_v52, %v1704_v29  ;;  %v1738_v52 = vld [vmem:[%s5527_s3 + $0x170] sm:$0xff] }
 0x129   :  { %v3495_v30 = vpack.c.bf16 %v2339_v21, %v2338_v28  ;;  %v1740_v21 = vld [vmem:[%s5527_s3 + $0x180] sm:$0xff] }
 0x12e   :  { %3491 = vmatpush3.bf16.xpose.msk.msra.mxu0 %vm3854_vm1, %v3489_v57 }
 0x12f   :  { %3539 = vmatpush3.bf16.xpose.msk.msra.mxu1 %vm3854_vm1, %v4787_v56  ;;  %3494 = vmatprep.subr.msk.bf16.mxu0 %vm3854_vm1, %v3492_v58  ;;  %v2357_v56 = vld [vmem:[%s5524_s0 + $0x5f8] sm:$0xff] }
 0x130   :  { %3542 = vmatprep.subr.msk.bf16.mxu1 %vm3854_vm1, %v4791_v62  ;;  %v3498_v53 = vpack.c.bf16 %v2357_v56, %v2356_v59  ;;  %v2340_v62 = vld [vmem:[%s5524_s0 + $0x570] sm:$0xff]  ;;  %v1741_v59 = vld [vmem:[%s5527_s3 + $0x188] sm:$0xff]  ;;  %v1772_v56 = vld [vmem:[%s5527_s3 + $0x280] sm:$0xff] }
 0x131   :  { %v3501_v55 = vpack.c.bf16 %v2341_v36, %v2340_v62  ;;  %v1724_v62 = vld [vmem:[%s5527_s3 + $0x100] sm:$0xff]  ;;  %v1725_v36 = vld [vmem:[%s5527_s3 + $0x108] sm:$0xff] }
 0x136   :  { %3497 = vmatpush3.bf16.xpose.msk.msra.mxu0 %vm3854_vm1, %v3495_v30 }
 0x137   :  { %3545 = vmatpush3.bf16.xpose.msk.msra.mxu1 %vm3854_vm1, %v4831_v23  ;;  %3500 = vmatprep.subr.msk.bf16.mxu0 %vm3854_vm1, %v3498_v53  ;;  %v1712_v23 = vld [vmem:[%s5527_s3 + $0xa0] sm:$0xff] }
 0x138   :  { %3548 = vmatprep.subr.msk.bf16.mxu1 %vm3854_vm1, %v4835_v24 }
 0x13e   :  { %3503 = vmatpush3.bf16.xpose.msk.msra.mxu0 %vm3854_vm1, %v3501_v55 }
 0x13f   :  { %3551 = vmatpush3.bf16.xpose.msk.msra.mxu1 %vm3854_vm1, %v4869_v0  ;;  %3554 = vmatprep.subr.msk.bf16.mxu0 %vm3854_vm1, %v4522_v40  ;;  %v1696_v0 = vld [vmem:[%s5527_s3 + $0x20] sm:$0xff] }
 0x140   :  { %3602 = vmatprep.subr.msk.bf16.mxu1 %vm3854_vm1, %v4873_v19  ;;  %v1714_v19 = vld [vmem:[%s5527_s3 + $0xb0] sm:$0xff] }
 0x145   :  { %2864 = vmatmul.mubr.msk.f32.vlgmr.msra.gmra.mrb[8].mxu0 %vm122_vm0, %v4004_v45 }
 0x146   :  { %2898 = vmatmul.mubr.msk.f32.vlgmr.msra.gmra.mrb[8].mxu1 %vm122_vm0, %v4245_v3  ;;  %3557 = vmatpush3.bf16.xpose.msk.msra.mxu0 %vm3854_vm1, %v4561_v37 }
 0x147   :  { %3605 = vmatpush3.bf16.xpose.msk.msra.mxu1 %vm3854_vm1, %v4899_v60  ;;  %3560 = vmatprep.subr.msk.bf16.mxu0 %vm3854_vm1, %v4565_v50 }
 0x148   :  { %3608 = vmatprep.subr.msk.bf16.mxu1 %vm3854_vm1, %v4901_v7  ;;  %2931 = vmatprep.mubr.msk.f32.mxu0 %vm122_vm0, %v4245_v3 }
 0x149   :  { %2965 = vmatprep.mubr.msk.f32.mxu1 %vm122_vm0, %v4245_v3 }
 0x14e   :  { %3563 = vmatpush3.bf16.xpose.msk.msra.mxu0 %vm3854_vm1, %v4613_v9  ;;  %v1708_v9 = vld [vmem:[%s5527_s3 + $0x80] sm:$0xff] }
 0x14f   :  { %3611 = vmatpush3.bf16.xpose.msk.msra.mxu1 %vm3854_vm1, %v4935_v38  ;;  %3566 = vmatprep.subr.msk.bf16.mxu0 %vm3854_vm1, %v4617_v13  ;;  %v1709_v13 = vld [vmem:[%s5527_s3 + $0x88] sm:$0xff]  ;;  %v1698_v38 = vld [vmem:[%s5527_s3 + $0x30] sm:$0xff] }
 0x150   :  { %3614 = vmatprep.subr.msk.bf16.mxu1 %vm3854_vm1, %v4937_v1  ;;  %v1699_v1 = vld [vmem:[%s5527_s3 + $0x38] sm:$0xff] }
 0x151   :  { %v3662_v16 = vpack.c.bf16 %v1699_v1, %v1698_v38  ;;  %v1733_v38 = vld [vmem:[%s5527_s3 + $0x148] sm:$0xff] }
 0x156   :  { %3569 = vmatpush3.bf16.xpose.msk.msra.mxu0 %vm3854_vm1, %v4657_v26  ;;  %v3648_v26 = vpack.c.bf16 %v1709_v13, %v1708_v9  ;;  %v1743_v9 = vld [vmem:[%s5527_s3 + $0x198] sm:$0xff] }
 0x157   :  { %3617 = vmatpush3.bf16.xpose.msk.msra.mxu1 %vm3854_vm1, %v4963_v35  ;;  %3572 = vmatprep.subr.msk.bf16.mxu0 %vm3854_vm1, %v4661_v31  ;;  %v1692_v31 = vld [vmem:[%s5527_s3] sm:$0xff] }
 0x158   :  { %3620 = vmatprep.subr.msk.bf16.mxu1 %vm3854_vm1, %v4965_v51  ;;  %v622_v45 = vpop.f32.mrb[2].mxu0  ;;  %v1700_v35 = vld [vmem:[%s5527_s3 + $0x40] sm:$0xff]  ;;  %v1701_v51 = vld [vmem:[%s5527_s3 + $0x48] sm:$0xff] }
 0x159   :  { %v5134_v40 = vpop.f32.mrb[2].mxu1  ;;  %631 = vst [vmem:[#allocation4 + $0x20] sm:$0xff] %v622_v45  ;;  %v624_v37 = vpop.f32.mrb[3].mxu0  ;;  %v3666_v11 = vpack.c.bf16 %v1701_v51, %v1700_v35  ;;  %v3682_v45 = vpack.c.bf16 %v1725_v36, %v1724_v62  ;;  %v1735_v35 = vld [vmem:[%s5527_s3 + $0x158] sm:$0xff] }
 0x15a   :  { %v5136_v50 = vpop.f32.mrb[3].mxu1  ;;  %632 = vst [vmem:[#allocation4 + $0x28] sm:$0xff] %v624_v37  ;;  %v1742_v37 = vld [vmem:[%s5527_s3 + $0x190] sm:$0xff]  ;;  %v1775_v62 = vld [vmem:[%s5527_s3 + $0x298] sm:$0xff] }
 0x15b   :  { %v3684_v13 = vpack.c.bf16 %v1743_v9, %v1742_v37 }
 0x15e   :  { %3575 = vmatpush3.bf16.xpose.msk.msra.mxu0 %vm3854_vm1, %v4701_v47  ;;  %v1693_v47 = vld [vmem:[%s5527_s3 + $0x8] sm:$0xff] }
 0x15f   :  { %3623 = vmatpush3.bf16.xpose.msk.msra.mxu1 %vm3854_vm1, %v4991_v15  ;;  %3578 = vmatprep.subr.msk.bf16.mxu0 %vm3854_vm1, %v4705_v48  ;;  %v1710_v48 = vld [vmem:[%s5527_s3 + $0x90] sm:$0xff]  ;;  %v3670_v15 = vpack.c.bf16 %v1703_v27, %v1702_v25  ;;  %v1737_v25 = vld [vmem:[%s5527_s3 + $0x168] sm:$0xff] }
 0x160   :  { %3626 = vmatprep.subr.msk.bf16.mxu1 %vm3854_vm1, %v4993_v17  ;;  %v3672_v17 = vpack.c.bf16 %v1721_v14, %v1720_v41  ;;  %v1754_v41 = vld [vmem:[%s5527_s3 + $0x1f0] sm:$0xff]  ;;  %v1755_v14 = vld [vmem:[%s5527_s3 + $0x1f8] sm:$0xff] }
 0x161   :  { %v3708_v29 = vpack.c.bf16 %v1755_v14, %v1754_v41  ;;  %v1770_v41 = vld [vmem:[%s5527_s3 + $0x270] sm:$0xff]  ;;  %v1771_v14 = vld [vmem:[%s5527_s3 + $0x278] sm:$0xff] }
 0x166   :  { %3581 = vmatpush3.bf16.xpose.msk.msra.mxu0 %vm3854_vm1, %v4745_v18  ;;  %v1711_v18 = vld [vmem:[%s5527_s3 + $0x98] sm:$0xff] }
 0x167   :  { %3629 = vmatpush3.bf16.xpose.msk.msra.mxu1 %vm3854_vm1, %v3483_v34  ;;  %3584 = vmatprep.subr.msk.bf16.mxu0 %vm3854_vm1, %v4749_v42  ;;  %v3650_v42 = vpack.c.bf16 %v1693_v47, %v1692_v31  ;;  %v3652_v4 = vpack.c.bf16 %v1711_v18, %v1710_v48  ;;  %v1722_v34 = vld [vmem:[%s5527_s3 + $0xf0] sm:$0xff]  ;;  %v1727_v31 = vld [vmem:[%s5527_s3 + $0x118] sm:$0xff]  ;;  %v1744_v48 = vld [vmem:[%s5527_s3 + $0x1a0] sm:$0xff] }
 0x168   :  { %3632 = vmatprep.subr.msk.bf16.mxu1 %vm3854_vm1, %v3486_v54  ;;  %v1723_v54 = vld [vmem:[%s5527_s3 + $0xf8] sm:$0xff]  ;;  %v1745_v18 = vld [vmem:[%s5527_s3 + $0x1a8] sm:$0xff] }
 0x169   :  { %v3676_v12 = vpack.c.bf16 %v1723_v54, %v1722_v34  ;;  %v1739_v34 = vld [vmem:[%s5527_s3 + $0x178] sm:$0xff] }
 0x16e   :  { %3587 = vmatpush3.bf16.xpose.msk.msra.mxu0 %vm3854_vm1, %v4789_v61  ;;  %v1694_v61 = vld [vmem:[%s5527_s3 + $0x10] sm:$0xff] }
 0x16f   :  { %3635 = vmatpush3.bf16.xpose.msk.msra.mxu1 %vm3854_vm1, %v3489_v57  ;;  %3590 = vmatprep.subr.msk.bf16.mxu0 %vm3854_vm1, %v4793_v63  ;;  %v1695_v63 = vld [vmem:[%s5527_s3 + $0x18] sm:$0xff]  ;;  %v1706_v57 = vld [vmem:[%s5527_s3 + $0x70] sm:$0xff] }
 0x170   :  { %3638 = vmatprep.subr.msk.bf16.mxu1 %vm3854_vm1, %v3492_v58  ;;  %v3654_v24 = vpack.c.bf16 %v1695_v63, %v1694_v61  ;;  %v1707_v58 = vld [vmem:[%s5527_s3 + $0x78] sm:$0xff]  ;;  %v1729_v61 = vld [vmem:[%s5527_s3 + $0x128] sm:$0xff] }
 0x171   :  { %v3678_v28 = vpack.c.bf16 %v1707_v58, %v1706_v57 }
 0x176   :  { %3593 = vmatpush3.bf16.xpose.msk.msra.mxu0 %vm3854_vm1, %v4833_v39  ;;  %v1713_v39 = vld [vmem:[%s5527_s3 + $0xa8] sm:$0xff] }
 0x177   :  { %3641 = vmatpush3.bf16.xpose.msk.msra.mxu1 %vm3854_vm1, %v3495_v30  ;;  %3596 = vmatprep.subr.msk.bf16.mxu0 %vm3854_vm1, %v4837_v32  ;;  %v3656_v32 = vpack.c.bf16 %v1713_v39, %v1712_v23  ;;  %v3680_v30 = vpack.c.bf16 %v1741_v59, %v1740_v21  ;;  %v1746_v23 = vld [vmem:[%s5527_s3 + $0x1b0] sm:$0xff]  ;;  %v1747_v39 = vld [vmem:[%s5527_s3 + $0x1b8] sm:$0xff]  ;;  %v1757_v21 = vld [vmem:[%s5527_s3 + $0x208] sm:$0xff] }
 0x178   :  { %3644 = vmatprep.subr.msk.bf16.mxu1 %vm3854_vm1, %v3498_v53  ;;  %v1773_v53 = vld [vmem:[%s5527_s3 + $0x288] sm:$0xff] }
 0x17e   :  { %3599 = vmatpush3.bf16.xpose.msk.msra.mxu0 %vm3854_vm1, %v4871_v49  ;;  %v1697_v49 = vld [vmem:[%s5527_s3 + $0x28] sm:$0xff] }
 0x17f   :  { %3647 = vmatpush3.bf16.xpose.msk.msra.mxu1 %vm3854_vm1, %v3501_v55  ;;  %3649 = vmatprep.subr.bf16.mxu0 %v3648_v26  ;;  %v3658_v60 = vpack.c.bf16 %v1697_v49, %v1696_v0  ;;  %v3712_v55 = vpack.c.bf16 %v1773_v53, %v1772_v56  ;;  %v1726_v26 = vld [vmem:[%s5527_s3 + $0x110] sm:$0xff]  ;;  %v1731_v0 = vld [vmem:[%s5527_s3 + $0x138] sm:$0xff] }
 0x180   :  { %3681 = vmatprep.subr.bf16.mxu1 %v3680_v30  ;;  %v3686_v47 = vpack.c.bf16 %v1727_v31, %v1726_v26  ;;  %v1774_v53 = vld [vmem:[%s5527_s3 + $0x290] sm:$0xff]  ;;  %v1759_v26 = vld [vmem:[%s5527_s3 + $0x218] sm:$0xff]  ;;  %v1776_v31 = vld [vmem:[%s5527_s3 + $0x2a0] sm:$0xff] }
 0x181   :  { %v3716_v9 = vpack.c.bf16 %v1775_v62, %v1774_v53 }
 0x185   :  { %2932 = vmatmul.mubr.msk.f32.vlgmr.msra.gmra.mrb[10].mxu0 %vm122_vm0, %v4245_v3 }
 0x186   :  { %2966 = vmatmul.mubr.msk.f32.vlgmr.msra.gmra.mrb[10].mxu1 %vm122_vm0, %v4245_v3  ;;  %3651 = vmatpush3.bf16.msra.mxu0 %v3650_v42  ;;  %v1715_v3 = vld [vmem:[%s5527_s3 + $0xb8] sm:$0xff]  ;;  %v3688_v42 = vpack.c.bf16 %v1745_v18, %v1744_v48  ;;  %v1760_v48 = vld [vmem:[%s5527_s3 + $0x220] sm:$0xff]  ;;  %v1761_v18 = vld [vmem:[%s5527_s3 + $0x228] sm:$0xff] }
 0x187   :  { %3653 = vmatprep.subr.bf16.mxu0 %v3652_v4  ;;  %v3660_v7 = vpack.c.bf16 %v1715_v3, %v1714_v19  ;;  %3683 = vmatpush3.bf16.msra.mxu1 %v3682_v45  ;;  %v1728_v4 = vld [vmem:[%s5527_s3 + $0x120] sm:$0xff]  ;;  %v1749_v3 = vld [vmem:[%s5527_s3 + $0x1c8] sm:$0xff] }
 0x188   :  { %3685 = vmatprep.subr.bf16.mxu1 %v3684_v13  ;;  %v3690_v63 = vpack.c.bf16 %v1729_v61, %v1728_v4  ;;  %v1748_v19 = vld [vmem:[%s5527_s3 + $0x1c0] sm:$0xff]  ;;  %v1758_v13 = vld [vmem:[%s5527_s3 + $0x210] sm:$0xff]  ;;  %v1779_v4 = vld [vmem:[%s5527_s3 + $0x2b8] sm:$0xff]  ;;  %v3722_v61 = vpack.c.bf16 %v1761_v18, %v1760_v48 }
 0x18a   :  { %3655 = vmatpush3.bf16.msra.mxu0 %v3654_v24  ;;  %v3692_v24 = vpack.c.bf16 %v1747_v39, %v1746_v23  ;;  %v1762_v23 = vld [vmem:[%s5527_s3 + $0x230] sm:$0xff]  ;;  %v1763_v39 = vld [vmem:[%s5527_s3 + $0x238] sm:$0xff] }
 0x18b   :  { %3657 = vmatprep.subr.bf16.mxu0 %v3656_v32  ;;  %3687 = vmatpush3.bf16.msra.mxu1 %v3686_v47  ;;  %v1730_v32 = vld [vmem:[%s5527_s3 + $0x130] sm:$0xff] }
 0x18c   :  { %3689 = vmatprep.subr.bf16.mxu1 %v3688_v42  ;;  %v3694_v49 = vpack.c.bf16 %v1731_v0, %v1730_v32  ;;  %v1778_v42 = vld [vmem:[%s5527_s3 + $0x2b0] sm:$0xff]  ;;  %v1781_v32 = vld [vmem:[%s5527_s3 + $0x2c8] sm:$0xff]  ;;  %v3726_v0 = vpack.c.bf16 %v1763_v39, %v1762_v23 }
 0x18e   :  { %3659 = vmatpush3.bf16.msra.mxu0 %v3658_v60  ;;  %v3696_v60 = vpack.c.bf16 %v1749_v3, %v1748_v19  ;;  %v1764_v19 = vld [vmem:[%s5527_s3 + $0x240] sm:$0xff]  ;;  %v1765_v3 = vld [vmem:[%s5527_s3 + $0x248] sm:$0xff] }
 0x18f   :  { %3661 = vmatprep.subr.bf16.mxu0 %v3660_v7  ;;  %3691 = vmatpush3.bf16.msra.mxu1 %v3690_v63  ;;  %v1732_v7 = vld [vmem:[%s5527_s3 + $0x140] sm:$0xff]  ;;  %v3724_v63 = vpack.c.bf16 %v1779_v4, %v1778_v42 }
 0x190   :  { %3693 = vmatprep.subr.bf16.mxu1 %v3692_v24  ;;  %v3698_v1 = vpack.c.bf16 %v1733_v38, %v1732_v7  ;;  %v1780_v24 = vld [vmem:[%s5527_s3 + $0x2c0] sm:$0xff]  ;;  %v1783_v7 = vld [vmem:[%s5527_s3 + $0x2d8] sm:$0xff]  ;;  %v3730_v38 = vpack.c.bf16 %v1765_v3, %v1764_v19 }
 0x192   :  { %3663 = vmatpush3.bf16.msra.mxu0 %v3662_v16  ;;  %v3700_v16 = vpack.c.bf16 %v1751_v20, %v1750_v5  ;;  %v1766_v5 = vld [vmem:[%s5527_s3 + $0x250] sm:$0xff]  ;;  %v1767_v20 = vld [vmem:[%s5527_s3 + $0x258] sm:$0xff] }
 0x193   :  { %3665 = vmatprep.subr.bf16.mxu0 %v3664_v22  ;;  %3695 = vmatpush3.bf16.msra.mxu1 %v3694_v49  ;;  %v1734_v22 = vld [vmem:[%s5527_s3 + $0x150] sm:$0xff]  ;;  %v3728_v49 = vpack.c.bf16 %v1781_v32, %v1780_v24 }
 0x194   :  { %3697 = vmatprep.subr.bf16.mxu1 %v3696_v60  ;;  %v3702_v51 = vpack.c.bf16 %v1735_v35, %v1734_v22  ;;  %v1782_v60 = vld [vmem:[%s5527_s3 + $0x2d0] sm:$0xff]  ;;  %v1785_v22 = vld [vmem:[%s5527_s3 + $0x2e8] sm:$0xff]  ;;  %v3734_v35 = vpack.c.bf16 %v1767_v20, %v1766_v5 }
 0x196   :  { %3667 = vmatpush3.bf16.msra.mxu0 %v3666_v11  ;;  %v3704_v11 = vpack.c.bf16 %v1753_v6, %v1752_v10  ;;  %v1768_v10 = vld [vmem:[%s5527_s3 + $0x260] sm:$0xff]  ;;  %v1769_v6 = vld [vmem:[%s5527_s3 + $0x268] sm:$0xff] }
 0x197   :  { %3669 = vmatprep.subr.bf16.mxu0 %v3668_v8  ;;  %3699 = vmatpush3.bf16.msra.mxu1 %v3698_v1  ;;  %v1736_v8 = vld [vmem:[%s5527_s3 + $0x160] sm:$0xff]  ;;  %v3732_v1 = vpack.c.bf16 %v1783_v7, %v1782_v60 }
 0x198   :  { %v5273_v46 = vpop.f32.mrb[4].mxu0  ;;  %3701 = vmatprep.subr.bf16.mxu1 %v3700_v16  ;;  %v3706_v27 = vpack.c.bf16 %v1737_v25, %v1736_v8  ;;  %v1784_v16 = vld [vmem:[%s5527_s3 + $0x2e0] sm:$0xff]  ;;  %v1787_v8 = vld [vmem:[%s5527_s3 + $0x2f8] sm:$0xff]  ;;  %v3738_v25 = vpack.c.bf16 %v1769_v6, %v1768_v10 }
 0x199   :  { %v5275_v33 = vpop.f32.mrb[4].mxu1  ;;  %v5283_v2 = vpop.f32.mrb[5].mxu0 }
 0x19a   :  { %v5285_v43 = vpop.f32.mrb[5].mxu1  ;;  %3671 = vmatpush3.bf16.msra.mxu0 %v3670_v15 }
 0x19b   :  { %3673 = vmatprep.subr.bf16.mxu0 %v3672_v17  ;;  %3703 = vmatpush3.bf16.msra.mxu1 %v3702_v51  ;;  %v3736_v51 = vpack.c.bf16 %v1785_v22, %v1784_v16 }
 0x19c   :  { %3705 = vmatprep.subr.bf16.mxu1 %v3704_v11  ;;  %v1786_v11 = vld [vmem:[%s5527_s3 + $0x2f0] sm:$0xff] }
 0x19e   :  { %3675 = vmatpush3.bf16.msra.mxu0 %v3674_v44 }
 0x19f   :  { %3677 = vmatprep.subr.bf16.mxu0 %v3676_v12  ;;  %3707 = vmatpush3.bf16.msra.mxu1 %v3706_v27  ;;  %v3710_v12 = vpack.c.bf16 %v1739_v34, %v1738_v52  ;;  %v3740_v27 = vpack.c.bf16 %v1787_v8, %v1786_v11 }
 0x1a0   :  { %3709 = vmatprep.subr.bf16.mxu1 %v3708_v29 }
 0x1a2   :  { %3679 = vmatpush3.bf16.msra.mxu0 %v3678_v28  ;;  %v1756_v28 = vld [vmem:[%s5527_s3 + $0x200] sm:$0xff] }
 0x1a3   :  { %3713 = vmatprep.subr.bf16.mxu0 %v3712_v55  ;;  %3711 = vmatpush3.bf16.msra.mxu1 %v3710_v12  ;;  %v3714_v45 = vpack.c.bf16 %v1757_v21, %v1756_v28 }
 0x1d8   :  { %v1300_v15 = vpop.f32.mrb[6].mxu0 }
 0x1d9   :  { %v1371_v17 = vpop.f32.mrb[6].mxu1  ;;  %1448 = vst [vmem:[#allocation4 + $0x30] sm:$0xff] %v1300_v15  ;;  %v1302_v54 = vpop.f32.mrb[7].mxu0  ;;  %v3742_v15 = vpack.c.bf16 %v1771_v14, %v1770_v41 }
 0x1da   :  { %1450 = vst [vmem:[#allocation4 + $0x40] sm:$0xff] %v1371_v17  ;;  %v1373_v44 = vpop.f32.mrb[7].mxu1  ;;  %1449 = vst [vmem:[#allocation4 + $0x38] sm:$0xff] %v1302_v54 }
 0x1db   :  { %1451 = vst [vmem:[#allocation4 + $0x48] sm:$0xff] %v1373_v44 }
 0x218   :  { %v1442_v57 = vpop.f32.mrb[8].mxu0 }
 0x219   :  { %v1520_v58 = vpop.f32.mrb[8].mxu1  ;;  %1452 = vst [vmem:[#allocation4 + $0x50] sm:$0xff] %v1442_v57  ;;  %v1444_v56 = vpop.f32.mrb[9].mxu0 }
 0x21a   :  { %v1673_v59 = vrot.slane %v1520_v58, 7  ;;  %v1522_v30 = vpop.f32.mrb[9].mxu1  ;;  %1453 = vst [vmem:[#allocation4 + $0x58] sm:$0xff] %v1444_v56 }
 0x21b   :  { %v1674_v36 = vrot.slane %v1522_v30, 7 }
 0x21c   :  { %v1686_v55 = vsel %vm1685_vm2, %v5134_v40, %v1673_v59  ;;  %v1777_v40 = vld [vmem:[%s5527_s3 + $0x2a8] sm:$0xff]  ;;  %s3799_s3 = smov [#allocation4]  }
 0x21d   :  { %v1687_v37 = vsel %vm1685_vm2, %v5136_v50, %v1674_v36  ;;  %v3718_v50 = vpack.c.bf16 %v1759_v26, %v1758_v13  ;;  %v3720_v47 = vpack.c.bf16 %v1777_v40, %v1776_v31  ;;  %s2049_s28 = sshll.u32 %s3799_s3, 4  ;;  %s2050_s28 = int_to_ptr.vmem [resolvable:$true] %s2049_s28 }
 0x21e   :  { %1859 = vmatprep.mubr.f32.mxu0 %v1687_v37  ;;  %s3751_s29 = scalar_lea.vmem %s2050_s28, 1536  ;;  %p3756_p1 = scmp.lt.s32.totalorder %s2050_s28, %s2050_s28 }
 0x21f   :  { %1860 = vmatmul.mubr.f32.vlgmr.msra.gmra.mrb[12].mxu0 %v1686_v55  ;;  %p3752_p0 = scmp.ne.s32.totalorder %s2050_s28, %s3751_s29  ;;  %p3757_p2 = scmp.lt.s32.totalorder %s3751_s29, %s3751_s29 }
 0x220   :  { %3715 = vmatpush3.bf16.msra.mxu0 %v3714_v45 }
 0x221   :  { %3717 = vmatprep.subr.bf16.mxu0 %v3716_v9  ;;  %p3758_p3 = por %p3757_p2, %p3756_p1 }
 0x223   :  { %p3759_p4 = pnand %p3758_p3, %p3752_p0 }
 0x224   :  { %3719 = vmatpush3.bf16.msra.mxu0 %v3718_v50 }
 0x225   :  { %3721 = vmatprep.subr.bf16.mxu0 %v3720_v47 }
 0x228   :  { %3723 = vmatpush3.bf16.msra.mxu0 %v3722_v61 }
 0x229   :  { %3725 = vmatprep.subr.bf16.mxu0 %v3724_v63 }
 0x22c   :  { %3727 = vmatpush3.bf16.msra.mxu0 %v3726_v0 }
 0x22d   :  { %3729 = vmatprep.subr.bf16.mxu0 %v3728_v49 }
 0x230   :  { %3731 = vmatpush3.bf16.msra.mxu0 %v3730_v38 }
 0x231   :  { %3733 = vmatprep.subr.bf16.mxu0 %v3732_v1 }
 0x234   :  { %3735 = vmatpush3.bf16.msra.mxu0 %v3734_v35 }
 0x235   :  { %3737 = vmatprep.subr.bf16.mxu0 %v3736_v51 }
 0x238   :  { %3739 = vmatpush3.bf16.msra.mxu0 %v3738_v25 }
 0x239   :  { %3741 = vmatprep.subr.bf16.mxu0 %v3740_v27 }
 0x23c   :  { %3743 = vmatpush3.bf16.msra.mxu0 %v3742_v15 }
 0x258   :  { %v1591_v17 = vpop.f32.mrb[10].mxu0 }
 0x259   :  { %v1662_v29 = vpop.f32.mrb[10].mxu1  ;;  %v1675_v52 = vrot.slane %v1591_v17, 7  ;;  %v1593_v54 = vpop.f32.mrb[11].mxu0 }
 0x25a   :  { %v1677_v34 = vrot.slane %v1662_v29, 7  ;;  %v1664_v44 = vpop.f32.mrb[11].mxu1  ;;  %v1676_v12 = vrot.slane %v1593_v54, 7 }
 0x25b   :  { %v1678_v57 = vrot.slane %v1664_v44, 7  ;;  %v1688_v58 = vsel %vm1685_vm2, %v5273_v46, %v1675_v52 }
 0x25c   :  { %v1690_v28 = vsel %vm1685_vm2, %v5275_v33, %v1677_v34  ;;  %v1689_v21 = vsel %vm1685_vm2, %v5283_v2, %v1676_v12 }
 0x25d   :  { %v1691_v59 = vsel %vm1685_vm2, %v5285_v43, %v1678_v57  ;;  %1929 = vmatprep.mubr.f32.mxu1 %v1689_v21 }
 0x25e   :  { %1999 = vmatprep.mubr.f32.mxu0 %v1691_v59  ;;  %1930 = vmatmul.mubr.f32.vlgmr.msra.gmra.mrb[12].mxu1 %v1688_v58 }
 0x25f   :  { %2000 = vmatmul.mubr.f32.vlgmr.msra.gmra.mrb[14].mxu0 %v1690_v28 }
 0x260   :  { %3762 = shalt.err (!%p3759_p4)
}
 0x261   :  { %s3763_s8 = scalar_lea.hbm %s5530_s6, 1536 }
 0x262   :  { %p3764_p5 = scmp.ne.s32.totalorder %s5530_s6, %s3763_s8  ;;  %p3767_p6 = scmp.lt.u32.totalorder %s3763_s8, %s5530_s6 }
 0x264   :  { %p3769_p7 = pnand %p3767_p6, %p3764_p5 }
 0x266   :  { %3772 = shalt.err (!%p3769_p7)
}
 0x267   :  { %s3800_s13 = smov 768   ;;  %s3801_s14 = smov 48   ;;  %v3802_v43 = vmov 1966171168   ;;  %v2009_v30 = vlaneseq  ;;  %v2556_v53 = vld [vmem:[%s5528_s4] ss:$0 sm:$0xff] }
 0x268   :  { %2055 = dma.vmem_to_hbm [thread:$0]  %s2050_s28, 1536, %s5530_s6, [#allocation5], %s3800_s13, %s3800_s13, %s3801_s14   ;;  %v2007_v56 = vunpack.c.l.s4 %v3802_v43 }
 0x269   :  { %v2010_v45 = vshrl.u32 %v2009_v30, 7  ;;  %s3803_s6 = smov [#allocation2]  }
 0x26a   :  { %v2008_v55 = vunpack.c.0.s8 %v2007_v56  ;;  %s2037_s18 = sshll.u32 %s3803_s6, 4  ;;  %s2038_s18 = int_to_ptr.vmem [resolvable:$true] %s2037_s18 }
 0x26b   :  { %s3773_s4 = scalar_lea.vmem %s2038_s18, 32  ;;  %p3778_p9 = scmp.lt.s32.totalorder %s2038_s18, %s2038_s18 }
 0x26c   :  { %v2011_v50 = vsub.s32 %v2008_v55, %v2010_v45  ;;  %p3774_p8 = scmp.ne.s32.totalorder %s2038_s18, %s3773_s4  ;;  %p3779_p10 = scmp.lt.s32.totalorder %s3773_s4, %s3773_s4 }
 0x26e   :  { %p3780_p11 = por %p3779_p10, %p3778_p9 }
 0x270   :  { %p3781_p12 = pnand %p3780_p11, %p3774_p8 }
 0x2f2   :  { %v2999_v46 = vpop.f32.mrb[12].mxu0 }
 0x2f3   :  { %v3000_v33 = vpop.f32.mrb[13].mxu0 }
 0x2f4   :  { %v3001_v2 = vadd.f32 %v3000_v33, %v2999_v46 }
 0x2f6   :  { %v1862_v13 = vadd.f32 %v3001_v2, %v2556_v53 }
 0x331   :  { %v3034_v62 = vpop.f32.mrb[12].mxu1 }
 0x332   :  { %v3069_v36 = vpop.f32.mrb[14].mxu0  ;;  %v3035_v37 = vpop.f32.mrb[13].mxu1 }
 0x333   :  { %v3070_v9 = vpop.f32.mrb[15].mxu0  ;;  %v3036_v26 = vadd.f32 %v3035_v37, %v3034_v62 }
 0x334   :  { %v3071_v31 = vadd.f32 %v3070_v9, %v3069_v36 }
 0x335   :  { %v1932_v40 = vadd.f32 %v3036_v26, %v1862_v13 }
 0x337   :  { %v2002_v47 = vadd.f32 %v3071_v31, %v1932_v40 }
 0x339   :  { %v2012_v48 = vrot.slane %v2002_v47, %v2011_v50 }
 0x33b   :  { %2557 = vst.sshfl [vmem:[#allocation2] sm:$0x1 pattern:$0x73625140] %v2012_v48  ;;  %v2013_v18 = vcombine.high %v2012_v48, %v2012_v48 }
 0x33d   :  { %2558 = vst.sshfl [vmem:[#allocation2 + $0x1] sm:$0x1 pattern:$0x73625140] %v2013_v18 }
 0x33e   :  { %3784 = shalt.err (!%p3781_p12)
}
 0x33f   :  { %s3785_s20 = scalar_lea.hbm %s5529_s5, 32 }
 0x340   :  { %p3786_p13 = scmp.ne.s32.totalorder %s5529_s5, %s3785_s20  ;;  %p3789_p0 = scmp.lt.u32.totalorder %s3785_s20, %s5529_s5 }
 0x342   :  { %p3791_p1 = pnand %p3789_p0, %p3786_p13 }
 0x344   :  { %3794 = shalt.err (!%p3791_p1)
}
 0x345   :  { %s3804_s25 = smov 16   ;;  %s3805_s0 = smov 1  }
 0x346   :  { %2043 = dma.vmem_to_hbm [thread:$0]  %s2038_s18, 32, %s5529_s5, [#allocation3], %s3804_s25, %s3804_s25, %s3805_s0  }
 0x347   :  { %3795 = dma.done.wait [#allocation3], 32  }
 0x348   :  { %3796 = vsyncadd [#allocation3], 4294967264 }
 0x349   :  { %3797 = dma.done.wait [#allocation5], 1536  }
 0x34a   :  { %3798 = vsyncadd [#allocation5], 4294965760 }
 0x34b   :  { %2062 = vsyncpa [#allocation3], 1 }
 0x34c   :  { %2063 = vsyncpa [#allocation5], 1 }

</bundles_post_ra>
